<compile_context>
chip_gen: v7x
topology: tpu7x:2x2x1
jax: 0.10.0
libtpu: 0.0.40
codegen_flags: <defaults>
</compile_context>

<pallas_src>
import functools
import math

import jax
import jax.numpy as jnp
from jax.experimental import pallas as pl
from jax.experimental.pallas import tpu as pltpu

NEG_SLOPE = 0.2
BN_EPS = 1e-5
PACK_TARGET = 256  # G*npg target: fills v6e/v7x MXU rows; = 2 row-passes on v5e


def _leaky_relu(x):
    return jnp.where(x > 0, x, NEG_SLOPE * x)


def _round_up(x, m):
    return ((x + m - 1) // m) * m


def _pad_to(a, shape):
    pads = [(0, t - s) for s, t in zip(a.shape, shape)]
    return jnp.pad(a, pads)


def _choose_pack(num_graphs, npg, target=PACK_TARGET):
    """Largest divisor G of num_graphs with G*npg <= target, keeping >=2 steps."""
    best = 1
    for g in range(1, num_graphs + 1):
        if num_graphs % g == 0 and g * npg <= target:
            best = g
    # keep at least 2 grid steps when the batch allows it (v7x: 2 TensorCores)
    while best > 1 and num_graphs // best < 2:
        best = max(d for d in range(1, best) if num_graphs % d == 0)
    return best


# ---------------- fused GCN kernel (G packed graphs per grid program) --------
# Each grid step processes G graphs packed as one block-diagonal adjacency tile:
#   for each conv layer:  z = leaky((A @ (z @ Wg)) @ Wl + bl) * scale + shift
#   pooled = P @ z   (P = per-graph mean-pool matrix, (G, G*npg))
#   out    = MLP(pooled)   -> (G, Cp) dense slab
def _make_fused_kernel(n_layers):
    def kernel(*refs):
        a_ref, x_ref, pm_ref = refs[0], refs[1], refs[2]
        conv_refs = refs[3:3 + 3 * n_layers]
        w1, b1, w2, b2, w3, b3 = refs[3 + 3 * n_layers:3 + 3 * n_layers + 6]
        o_ref = refs[-1]

        a = a_ref[...]                              # (Gn, Gn) f32 block-diag A_norm
        z = x_ref[...]                              # (Gn, Fp)  f32

        for layer in range(n_layers):
            wg, wl, vec = conv_refs[3 * layer:3 * layer + 3]
            xw = jnp.dot(z, wg[...], preferred_element_type=jnp.float32)
            h = jnp.dot(a, xw, preferred_element_type=jnp.float32)
            h = jnp.dot(h, wl[...], preferred_element_type=jnp.float32)
            v = vec[...]                            # (3, Hp): bias / bn-scale / bn-shift
            h = _leaky_relu(h + v[0:1, :])
            z = h * v[1:2, :] + v[2:3, :]           # folded eval-mode BatchNorm

        # global_mean_pool for the G graphs of this step, as one MXU matmul
        pooled = jnp.dot(pm_ref[...], z, preferred_element_type=jnp.float32)  # (G, Hp)

        h = _leaky_relu(jnp.dot(pooled, w1[...],
                                preferred_element_type=jnp.float32) + b1[...])
        h = _leaky_relu(jnp.dot(h, w2[...],
                                preferred_element_type=jnp.float32) + b2[...])
        o_ref[...] = jnp.dot(h, w3[...],
                             preferred_element_type=jnp.float32) + b3[...]

    return kernel


# ------------- glue: gcn_norm -> packed block-diagonal adjacency tiles -------
def build_norm_adjacency_packed(edge_index, edge_weight, num_graphs, npg, pack):
    n = num_graphs * npg
    src, tgt = edge_index[0], edge_index[1]
    loop = jnp.arange(n, dtype=src.dtype)           # add self loops (fill=1)
    src = jnp.concatenate([src, loop])
    tgt = jnp.concatenate([tgt, loop])
    w = jnp.concatenate([edge_weight, jnp.ones((n,), jnp.float32)])
    deg = jnp.zeros((n,), jnp.float32).at[tgt].add(w)
    dinv = jnp.where(deg > 0, jax.lax.rsqrt(deg), 0.0)
    norm = dinv[src] * w * dinv[tgt]
    # PyG batching keeps edges intra-graph -> global adjacency is block-diagonal.
    # Pack `pack` consecutive graphs into one (pack*npg, pack*npg) tile;
    # A[target, source] = norm.
    gn = pack * npg
    step = tgt // gn
    lt = tgt - step * gn
    ls = src - step * gn
    num_steps = num_graphs // pack
    return jnp.zeros((num_steps, gn, gn), jnp.float32).at[step, lt, ls].add(norm)


@functools.partial(jax.jit, static_argnames=("num_nodes_per_graph",))
def gcn_forward(x, edge_index, edge_attr, params, num_nodes_per_graph):
    npg = num_nodes_per_graph
    n_total, in_dim = x.shape
    num_graphs = n_total // npg
    n_layers = len(params["convs"])
    hidden = params["convs"][0]["wl"].shape[1]
    h2 = params["fcn"]["w2"].shape[1]
    num_classes = params["fcn"]["w3"].shape[1]

    # lane-dense padded widths
    Fp = _round_up(in_dim, 128)
    Hp = _round_up(hidden, 128)
    H2p = _round_up(h2, 128)
    Cp = _round_up(num_classes, 128)

    # graph packing: G graphs per grid step, block-diagonal adjacency of side Gn
    G = _choose_pack(num_graphs, npg)
    Gn = G * npg
    num_steps = num_graphs // G

    # --- inputs ---
    ew = jnp.abs(edge_attr).astype(jnp.float32)
    a = build_norm_adjacency_packed(edge_index, ew, num_graphs, npg, G)  # f32
    xg = _pad_to(x.astype(jnp.float32).reshape(num_steps, Gn, in_dim),
                 (num_steps, Gn, Fp))
    # per-graph mean-pool matrix: pm[g, g*npg:(g+1)*npg] = 1/npg
    pm = jnp.repeat(jnp.eye(G, dtype=jnp.float32), npg, axis=1) / float(npg)

    # --- fold + pad per-layer parameters (f32, kept MXU-resident) ---
    conv_args = []
    kin = Fp
    for p in params["convs"]:
        wg = _pad_to(p["wg"], (kin, Hp))
        wl = _pad_to(p["wl"], (Hp, Hp))
        scale = p["gamma"] * jax.lax.rsqrt(p["var"] + BN_EPS)
        shift = p["beta"] - p["mean"] * scale
        vec = jnp.concatenate([_pad_to(p["bl"], (1, Hp)),
                               _pad_to(scale, (1, Hp)),
                               _pad_to(shift, (1, Hp))], axis=0)       # (3, Hp)
        conv_args += [wg, wl, vec]
        kin = Hp

    f = params["fcn"]
    head_args = [
        _pad_to(f["w1"], (Hp, Hp)), _pad_to(f["b1"], (1, Hp)),
        _pad_to(f["w2"], (Hp, H2p)), _pad_to(f["b2"], (1, H2p)),
        _pad_to(f["w3"], (H2p, Cp)), _pad_to(f["b3"], (1, Cp)),
    ]

    # --- cost estimate (advisory) ---
    flops = 0
    kin = Fp
    for _ in range(n_layers):
        flops += 2 * Gn * kin * Hp      # z @ Wg
        flops += 2 * Gn * Gn * Hp       # A @ xw
        flops += 2 * Gn * Hp * Hp       # h @ Wl
        kin = Hp
    flops += 2 * G * Gn * Hp            # pooling matmul
    flops += 2 * G * (Hp * Hp + Hp * H2p + H2p * Cp)
    flops *= num_steps
    weight_bytes = 4 * (pm.size + sum(int(w.size) for w in conv_args + head_args))
    bytes_accessed = 4 * (int(a.size) + int(xg.size) + num_steps * G * Cp) + weight_bytes
    cost = pl.CostEstimate(flops=int(flops), transcendentals=0,
                           bytes_accessed=int(bytes_accessed))

    # --- BlockSpecs: per-step packed blocks for A / X / out, resident weights ---
    in_specs = [
        pl.BlockSpec((None, Gn, Gn), lambda s: (s, 0, 0)),
        pl.BlockSpec((None, Gn, Fp), lambda s: (s, 0, 0)),
        pl.BlockSpec((G, Gn), lambda s: (0, 0)),
    ]
    flat_args = [a, xg, pm]
    for arr in conv_args + head_args:
        in_specs.append(pl.BlockSpec(arr.shape, lambda s, nd=arr.ndim: (0,) * nd))
        flat_args.append(arr)

    out = pl.pallas_call(
        _make_fused_kernel(n_layers),
        out_shape=jax.ShapeDtypeStruct((num_steps, G, Cp), jnp.float32),
        grid=(num_steps,),
        in_specs=in_specs,
        out_specs=pl.BlockSpec((None, G, Cp), lambda s: (s, 0, 0)),
        compiler_params=pltpu.CompilerParams(
            dimension_semantics=("parallel",)),
        cost_estimate=cost,
    )(*flat_args)

    return out.reshape(num_graphs, Cp)[:, :num_classes]


# ---------------- deterministic parameter init ----------------
def glorot(key, shape):
    lim = math.sqrt(6.0 / (shape[0] + shape[1]))
    return jax.random.uniform(key, shape, jnp.float32, -lim, lim)


def make_conv_params(key, in_dim, hidden):
    ks = jax.random.split(key, 6)
    return {
        # MPGCNConv bias is zeroed by reset_parameters() -> dropped (no-op add)
        "wg": glorot(ks[0], (in_dim, hidden)),
        "wl": glorot(ks[1], (hidden, hidden)),
        "bl": 0.1 * jax.random.normal(ks[2], (1, hidden), jnp.float32),
        "gamma": 1.0 + 0.1 * jax.random.normal(ks[3], (1, hidden), jnp.float32),
        "beta": 0.1 * jax.random.normal(ks[4], (1, hidden), jnp.float32),
        "mean": 0.05 * jax.random.normal(ks[5], (1, hidden), jnp.float32),
        "var": jnp.ones((1, hidden), jnp.float32),
    }


def make_params(key, input_dim, hidden, num_classes, n_gnn_layers):
    keys = jax.random.split(key, n_gnn_layers + 6)
    convs = []
    in_dim = input_dim
    for i in range(n_gnn_layers):                    # (n-1) hidden blocks + 1 final block
        convs.append(make_conv_params(keys[i], in_dim, hidden))
        in_dim = hidden
    k = n_gnn_layers
    fcn = {
        "w1": glorot(keys[k + 0], (hidden, hidden)),
        "b1": 0.1 * jax.random.normal(keys[k + 1], (1, hidden), jnp.float32),
        "w2": glorot(keys[k + 2], (hidden, hidden // 2)),
        "b2": 0.1 * jax.random.normal(keys[k + 3], (1, hidden // 2), jnp.float32),
        "w3": glorot(keys[k + 4], (hidden // 2, num_classes)),
        "b3": 0.1 * jax.random.normal(keys[k + 5], (1, num_classes), jnp.float32),
    }
    return {"convs": convs, "fcn": fcn}


if __name__ == "__main__":
    # config: batch of 32 graphs x 16 nodes (packs to 16 graphs / 256 rows per
    # grid step, 2 grid steps), 8 input features, hidden_dim=32, n_GNN_layers=2,
    # num_classes=2, pooling='mean'
    num_graphs = 32
    nodes_per_graph = 16
    input_dim = 8
    hidden_dim = 32
    num_classes = 2
    n_gnn_layers = 2
    edges_per_graph = 40

    key = jax.random.PRNGKey(0)
    k_x, k_src, k_tgt, k_ea, k_params = jax.random.split(key, 5)

    n_total = num_graphs * nodes_per_graph
    x = jax.random.normal(k_x, (n_total, input_dim), jnp.float32)

    # random intra-graph edges (offset per graph), plus per-edge weights
    src = jax.random.randint(k_src, (num_graphs, edges_per_graph), 0, nodes_per_graph)
    tgt = jax.random.randint(k_tgt, (num_graphs, edges_per_graph), 0, nodes_per_graph)
    offset = (jnp.arange(num_graphs) * nodes_per_graph)[:, None]
    edge_index = jnp.stack([(src + offset).reshape(-1),
                            (tgt + offset).reshape(-1)]).astype(jnp.int32)
    edge_attr = jax.random.normal(k_ea, (num_graphs * edges_per_graph,), jnp.float32)

    # batch vector (global_mean_pool grouping) — equal graph sizes, so the kernel
    # derives the grouping from num_nodes_per_graph instead of this vector.
    batch = jnp.repeat(jnp.arange(num_graphs, dtype=jnp.int32), nodes_per_graph)

    params = make_params(k_params, input_dim, hidden_dim, num_classes, n_gnn_layers)

    out = gcn_forward(x, edge_index, edge_attr, params, nodes_per_graph)
    out = jax.block_until_ready(out)
    assert out.shape == (num_graphs, num_classes)
    assert bool(jnp.all(jnp.isfinite(out)))
    print("KERNEL_OK")
</pallas_src>

<mosaic_0001>
module attributes {stable_mosaic.version = 11 : i64} {
  func.func private @main(%arg0: i32) attributes {dimension_semantics = [#tpu.dimension_semantics<core_parallel>], iteration_bounds = array<i64: 2>, tpu.core_type = #tpu.core_type<sc_scalar_subcore>, window_params = []} {
    return
  }
}

module attributes {stable_mosaic.version = 11 : i64} {
  func.func private @main(%arg0: i32) attributes {dimension_semantics = [#tpu.dimension_semantics<core_parallel>], iteration_bounds = array<i64: 2>, tpu.core_type = #tpu.core_type<sc_scalar_subcore>, window_params = []} {
    return
  }
}

module attributes {stable_mosaic.version = 11 : i64} {
  func.func @kernel(%arg0: i32, %arg1: memref<1x256x256xf32, #tpu.memory_space<vmem>>, %arg2: memref<1x256x128xf32, #tpu.memory_space<vmem>>, %arg3: memref<16x256xf32, #tpu.memory_space<vmem>>, %arg4: memref<128x128xf32, #tpu.memory_space<vmem>>, %arg5: memref<128x128xf32, #tpu.memory_space<vmem>>, %arg6: memref<3x128xf32, #tpu.memory_space<vmem>>, %arg7: memref<128x128xf32, #tpu.memory_space<vmem>>, %arg8: memref<128x128xf32, #tpu.memory_space<vmem>>, %arg9: memref<3x128xf32, #tpu.memory_space<vmem>>, %arg10: memref<128x128xf32, #tpu.memory_space<vmem>>, %arg11: memref<1x128xf32, #tpu.memory_space<vmem>>, %arg12: memref<128x128xf32, #tpu.memory_space<vmem>>, %arg13: memref<1x128xf32, #tpu.memory_space<vmem>>, %arg14: memref<128x128xf32, #tpu.memory_space<vmem>>, %arg15: memref<1x128xf32, #tpu.memory_space<vmem>>, %arg16: memref<1x16x128xf32, #tpu.memory_space<vmem>>) attributes {dimension_semantics = [#tpu.dimension_semantics<parallel>], iteration_bounds = array<i64: 2>, scalar_prefetch = 0 : i64, scratch_operands = 0 : i64, tpu.core_type = #tpu.core_type<tc>, window_params = [{transform_indices = @transform_0, window_bounds = array<i64: 1, 256, 256>}, {transform_indices = @transform_1, window_bounds = array<i64: 1, 256, 128>}, {pipeline_mode = #tpu.pipeline_mode<synchronous>, transform_indices = @transform_2, window_bounds = array<i64: 16, 256>}, {pipeline_mode = #tpu.pipeline_mode<synchronous>, transform_indices = @transform_3, window_bounds = array<i64: 128, 128>}, {pipeline_mode = #tpu.pipeline_mode<synchronous>, transform_indices = @transform_4, window_bounds = array<i64: 128, 128>}, {pipeline_mode = #tpu.pipeline_mode<synchronous>, transform_indices = @transform_5, window_bounds = array<i64: 3, 128>}, {pipeline_mode = #tpu.pipeline_mode<synchronous>, transform_indices = @transform_6, window_bounds = array<i64: 128, 128>}, {pipeline_mode = #tpu.pipeline_mode<synchronous>, transform_indices = @transform_7, window_bounds = array<i64: 128, 128>}, {pipeline_mode = #tpu.pipeline_mode<synchronous>, transform_indices = @transform_8, window_bounds = array<i64: 3, 128>}, {pipeline_mode = #tpu.pipeline_mode<synchronous>, transform_indices = @transform_9, window_bounds = array<i64: 128, 128>}, {pipeline_mode = #tpu.pipeline_mode<synchronous>, transform_indices = @transform_10, window_bounds = array<i64: 1, 128>}, {pipeline_mode = #tpu.pipeline_mode<synchronous>, transform_indices = @transform_11, window_bounds = array<i64: 128, 128>}, {pipeline_mode = #tpu.pipeline_mode<synchronous>, transform_indices = @transform_12, window_bounds = array<i64: 1, 128>}, {pipeline_mode = #tpu.pipeline_mode<synchronous>, transform_indices = @transform_13, window_bounds = array<i64: 128, 128>}, {pipeline_mode = #tpu.pipeline_mode<synchronous>, transform_indices = @transform_14, window_bounds = array<i64: 1, 128>}, {transform_indices = @transform_15, window_bounds = array<i64: 1, 16, 128>}]} {
    %c0 = arith.constant 0 : index
    %c0_0 = arith.constant 0 : index
    %c0_1 = arith.constant 0 : index
    %0 = vector.load %arg1[%c0, %c0_0, %c0_1] : memref<1x256x256xf32, #tpu.memory_space<vmem>>, vector<1x256x256xf32>
    %1 = vector.shape_cast %0 : vector<1x256x256xf32> to vector<256x256xf32>
    %c0_2 = arith.constant 0 : index
    %c0_3 = arith.constant 0 : index
    %c0_4 = arith.constant 0 : index
    %2 = vector.load %arg2[%c0_2, %c0_3, %c0_4] : memref<1x256x128xf32, #tpu.memory_space<vmem>>, vector<1x256x128xf32>
    %3 = vector.shape_cast %2 : vector<1x256x128xf32> to vector<256x128xf32>
    %c0_5 = arith.constant 0 : index
    %c0_6 = arith.constant 0 : index
    %4 = vector.load %arg4[%c0_5, %c0_6] : memref<128x128xf32, #tpu.memory_space<vmem>>, vector<128x128xf32>
    %cst = arith.constant dense<0.000000e+00> : vector<256x128xf32>
    %5 = tpu.matmul %3, %4, %cst {dimension_numbers = #tpu.dot_dimension_numbers<[1], [0], [0], [1], [0, 0, 1, 1], [], []>} : vector<256x128xf32>, vector<128x128xf32>, vector<256x128xf32> -> vector<256x128xf32>
    %cst_7 = arith.constant dense<0.000000e+00> : vector<256x128xf32>
    %6 = tpu.matmul %1, %5, %cst_7 {dimension_numbers = #tpu.dot_dimension_numbers<[1], [0], [0], [1], [0, 0, 1, 1], [], []>} : vector<256x256xf32>, vector<256x128xf32>, vector<256x128xf32> -> vector<256x128xf32>
    %c0_8 = arith.constant 0 : index
    %c0_9 = arith.constant 0 : index
    %7 = vector.load %arg5[%c0_8, %c0_9] : memref<128x128xf32, #tpu.memory_space<vmem>>, vector<128x128xf32>
    %cst_10 = arith.constant dense<0.000000e+00> : vector<256x128xf32>
    %8 = tpu.matmul %6, %7, %cst_10 {dimension_numbers = #tpu.dot_dimension_numbers<[1], [0], [0], [1], [0, 0, 1, 1], [], []>} : vector<256x128xf32>, vector<128x128xf32>, vector<256x128xf32> -> vector<256x128xf32>
    %c0_11 = arith.constant 0 : index
    %c0_12 = arith.constant 0 : index
    %9 = vector.load %arg6[%c0_11, %c0_12] : memref<3x128xf32, #tpu.memory_space<vmem>>, vector<3x128xf32>
    %10 = vector.extract_strided_slice %9 {offsets = [0, 0], sizes = [1, 128], strides = [1, 1]} : vector<3x128xf32> to vector<1x128xf32>
    %11 = vector.broadcast %10 : vector<1x128xf32> to vector<256x128xf32>
    %12 = arith.addf %8, %11 : vector<256x128xf32>
    %cst_13 = arith.constant 0.000000e+00 : f32
    %13 = vector.broadcast %cst_13 : f32 to vector<256x128xf32>
    %14 = arith.cmpf ogt, %12, %13 : vector<256x128xf32>
    %cst_14 = arith.constant 2.000000e-01 : f32
    %15 = vector.broadcast %cst_14 : f32 to vector<256x128xf32>
    %16 = arith.mulf %15, %12 : vector<256x128xf32>
    %17 = arith.select %14, %12, %16 : vector<256x128xi1>, vector<256x128xf32>
    %18 = vector.extract_strided_slice %9 {offsets = [1, 0], sizes = [1, 128], strides = [1, 1]} : vector<3x128xf32> to vector<1x128xf32>
    %19 = vector.broadcast %18 : vector<1x128xf32> to vector<256x128xf32>
    %20 = arith.mulf %17, %19 : vector<256x128xf32>
    %21 = vector.extract_strided_slice %9 {offsets = [2, 0], sizes = [1, 128], strides = [1, 1]} : vector<3x128xf32> to vector<1x128xf32>
    %22 = vector.broadcast %21 : vector<1x128xf32> to vector<256x128xf32>
    %23 = arith.addf %20, %22 : vector<256x128xf32>
    %c0_15 = arith.constant 0 : index
    %c0_16 = arith.constant 0 : index
    %24 = vector.load %arg7[%c0_15, %c0_16] : memref<128x128xf32, #tpu.memory_space<vmem>>, vector<128x128xf32>
    %cst_17 = arith.constant dense<0.000000e+00> : vector<256x128xf32>
    %25 = tpu.matmul %23, %24, %cst_17 {dimension_numbers = #tpu.dot_dimension_numbers<[1], [0], [0], [1], [0, 0, 1, 1], [], []>} : vector<256x128xf32>, vector<128x128xf32>, vector<256x128xf32> -> vector<256x128xf32>
    %cst_18 = arith.constant dense<0.000000e+00> : vector<256x128xf32>
    %26 = tpu.matmul %1, %25, %cst_18 {dimension_numbers = #tpu.dot_dimension_numbers<[1], [0], [0], [1], [0, 0, 1, 1], [], []>} : vector<256x256xf32>, vector<256x128xf32>, vector<256x128xf32> -> vector<256x128xf32>
    %c0_19 = arith.constant 0 : index
    %c0_20 = arith.constant 0 : index
    %27 = vector.load %arg8[%c0_19, %c0_20] : memref<128x128xf32, #tpu.memory_space<vmem>>, vector<128x128xf32>
    %cst_21 = arith.constant dense<0.000000e+00> : vector<256x128xf32>
    %28 = tpu.matmul %26, %27, %cst_21 {dimension_numbers = #tpu.dot_dimension_numbers<[1], [0], [0], [1], [0, 0, 1, 1], [], []>} : vector<256x128xf32>, vector<128x128xf32>, vector<256x128xf32> -> vector<256x128xf32>
    %c0_22 = arith.constant 0 : index
    %c0_23 = arith.constant 0 : index
    %29 = vector.load %arg9[%c0_22, %c0_23] : memref<3x128xf32, #tpu.memory_space<vmem>>, vector<3x128xf32>
    %30 = vector.extract_strided_slice %29 {offsets = [0, 0], sizes = [1, 128], strides = [1, 1]} : vector<3x128xf32> to vector<1x128xf32>
    %31 = vector.broadcast %30 : vector<1x128xf32> to vector<256x128xf32>
    %32 = arith.addf %28, %31 : vector<256x128xf32>
    %cst_24 = arith.constant 0.000000e+00 : f32
    %33 = vector.broadcast %cst_24 : f32 to vector<256x128xf32>
    %34 = arith.cmpf ogt, %32, %33 : vector<256x128xf32>
    %cst_25 = arith.constant 2.000000e-01 : f32
    %35 = vector.broadcast %cst_25 : f32 to vector<256x128xf32>
    %36 = arith.mulf %35, %32 : vector<256x128xf32>
    %37 = arith.select %34, %32, %36 : vector<256x128xi1>, vector<256x128xf32>
    %38 = vector.extract_strided_slice %29 {offsets = [1, 0], sizes = [1, 128], strides = [1, 1]} : vector<3x128xf32> to vector<1x128xf32>
    %39 = vector.broadcast %38 : vector<1x128xf32> to vector<256x128xf32>
    %40 = arith.mulf %37, %39 : vector<256x128xf32>
    %41 = vector.extract_strided_slice %29 {offsets = [2, 0], sizes = [1, 128], strides = [1, 1]} : vector<3x128xf32> to vector<1x128xf32>
    %42 = vector.broadcast %41 : vector<1x128xf32> to vector<256x128xf32>
    %43 = arith.addf %40, %42 : vector<256x128xf32>
    %c0_26 = arith.constant 0 : index
    %c0_27 = arith.constant 0 : index
    %44 = vector.load %arg3[%c0_26, %c0_27] : memref<16x256xf32, #tpu.memory_space<vmem>>, vector<16x256xf32>
    %cst_28 = arith.constant dense<0.000000e+00> : vector<16x128xf32>
    %45 = tpu.matmul %44, %43, %cst_28 {dimension_numbers = #tpu.dot_dimension_numbers<[1], [0], [0], [1], [0, 0, 1, 1], [], []>} : vector<16x256xf32>, vector<256x128xf32>, vector<16x128xf32> -> vector<16x128xf32>
    %c0_29 = arith.constant 0 : index
    %c0_30 = arith.constant 0 : index
    %46 = vector.load %arg10[%c0_29, %c0_30] : memref<128x128xf32, #tpu.memory_space<vmem>>, vector<128x128xf32>
    %cst_31 = arith.constant dense<0.000000e+00> : vector<16x128xf32>
    %47 = tpu.matmul %45, %46, %cst_31 {dimension_numbers = #tpu.dot_dimension_numbers<[1], [0], [0], [1], [0, 0, 1, 1], [], []>} : vector<16x128xf32>, vector<128x128xf32>, vector<16x128xf32> -> vector<16x128xf32>
    %c0_32 = arith.constant 0 : index
    %c0_33 = arith.constant 0 : index
    %48 = vector.load %arg11[%c0_32, %c0_33] : memref<1x128xf32, #tpu.memory_space<vmem>>, vector<1x128xf32>
    %49 = vector.broadcast %48 : vector<1x128xf32> to vector<16x128xf32>
    %50 = arith.addf %47, %49 : vector<16x128xf32>
    %cst_34 = arith.constant 0.000000e+00 : f32
    %51 = vector.broadcast %cst_34 : f32 to vector<16x128xf32>
    %52 = arith.cmpf ogt, %50, %51 : vector<16x128xf32>
    %cst_35 = arith.constant 2.000000e-01 : f32
    %53 = vector.broadcast %cst_35 : f32 to vector<16x128xf32>
    %54 = arith.mulf %53, %50 : vector<16x128xf32>
    %55 = arith.select %52, %50, %54 : vector<16x128xi1>, vector<16x128xf32>
    %c0_36 = arith.constant 0 : index
    %c0_37 = arith.constant 0 : index
    %56 = vector.load %arg12[%c0_36, %c0_37] : memref<128x128xf32, #tpu.memory_space<vmem>>, vector<128x128xf32>
    %cst_38 = arith.constant dense<0.000000e+00> : vector<16x128xf32>
    %57 = tpu.matmul %55, %56, %cst_38 {dimension_numbers = #tpu.dot_dimension_numbers<[1], [0], [0], [1], [0, 0, 1, 1], [], []>} : vector<16x128xf32>, vector<128x128xf32>, vector<16x128xf32> -> vector<16x128xf32>
    %c0_39 = arith.constant 0 : index
    %c0_40 = arith.constant 0 : index
    %58 = vector.load %arg13[%c0_39, %c0_40] : memref<1x128xf32, #tpu.memory_space<vmem>>, vector<1x128xf32>
    %59 = vector.broadcast %58 : vector<1x128xf32> to vector<16x128xf32>
    %60 = arith.addf %57, %59 : vector<16x128xf32>
    %cst_41 = arith.constant 0.000000e+00 : f32
    %61 = vector.broadcast %cst_41 : f32 to vector<16x128xf32>
    %62 = arith.cmpf ogt, %60, %61 : vector<16x128xf32>
    %cst_42 = arith.constant 2.000000e-01 : f32
    %63 = vector.broadcast %cst_42 : f32 to vector<16x128xf32>
    %64 = arith.mulf %63, %60 : vector<16x128xf32>
    %65 = arith.select %62, %60, %64 : vector<16x128xi1>, vector<16x128xf32>
    %c0_43 = arith.constant 0 : index
    %c0_44 = arith.constant 0 : index
    %66 = vector.load %arg14[%c0_43, %c0_44] : memref<128x128xf32, #tpu.memory_space<vmem>>, vector<128x128xf32>
    %cst_45 = arith.constant dense<0.000000e+00> : vector<16x128xf32>
    %67 = tpu.matmul %65, %66, %cst_45 {dimension_numbers = #tpu.dot_dimension_numbers<[1], [0], [0], [1], [0, 0, 1, 1], [], []>} : vector<16x128xf32>, vector<128x128xf32>, vector<16x128xf32> -> vector<16x128xf32>
    %c0_46 = arith.constant 0 : index
    %c0_47 = arith.constant 0 : index
    %68 = vector.load %arg15[%c0_46, %c0_47] : memref<1x128xf32, #tpu.memory_space<vmem>>, vector<1x128xf32>
    %69 = vector.broadcast %68 : vector<1x128xf32> to vector<16x128xf32>
    %70 = arith.addf %67, %69 : vector<16x128xf32>
    %c0_48 = arith.constant 0 : index
    %c0_49 = arith.constant 0 : index
    %c0_50 = arith.constant 0 : index
    %71 = vector.load %arg16[%c0_48, %c0_49, %c0_50] : memref<1x16x128xf32, #tpu.memory_space<vmem>>, vector<1x16x128xf32>
    %72 = vector.shape_cast %71 : vector<1x16x128xf32> to vector<16x128xf32>
    %73 = vector.shape_cast %70 : vector<16x128xf32> to vector<1x16x128xf32>
    tpu.vector_store %arg16[%c0_48, %c0_49, %c0_50], %73 {strides = array<i32>} : memref<1x16x128xf32, #tpu.memory_space<vmem>>, vector<1x16x128xf32>,
    return
  }
  func.func @transform_0(%arg0: i32) -> (i32, i32, i32) {
    %c0_i32 = arith.constant 0 : i32
    %c0_i32_0 = arith.constant 0 : i32
    %c0_i32_1 = arith.constant 0 : i32
    return %arg0, %c0_i32, %c0_i32_0 : i32, i32, i32
  }
  func.func @transform_1(%arg0: i32) -> (i32, i32, i32) {
    %c0_i32 = arith.constant 0 : i32
    %c0_i32_0 = arith.constant 0 : i32
    %c0_i32_1 = arith.constant 0 : i32
    return %arg0, %c0_i32, %c0_i32_0 : i32, i32, i32
  }
  func.func @transform_2(%arg0: i32) -> (i32, i32) {
    %c0_i32 = arith.constant 0 : i32
    %c0_i32_0 = arith.constant 0 : i32
    %c0_i32_1 = arith.constant 0 : i32
    return %c0_i32, %c0_i32_0 : i32, i32
  }
  func.func @transform_3(%arg0: i32) -> (i32, i32) {
    %c0_i32 = arith.constant 0 : i32
    %c0_i32_0 = arith.constant 0 : i32
    %c0_i32_1 = arith.constant 0 : i32
    return %c0_i32, %c0_i32_0 : i32, i32
  }
  func.func @transform_4(%arg0: i32) -> (i32, i32) {
    %c0_i32 = arith.constant 0 : i32
    %c0_i32_0 = arith.constant 0 : i32
    %c0_i32_1 = arith.constant 0 : i32
    return %c0_i32, %c0_i32_0 : i32, i32
  }
  func.func @transform_5(%arg0: i32) -> (i32, i32) {
    %c0_i32 = arith.constant 0 : i32
    %c0_i32_0 = arith.constant 0 : i32
    %c0_i32_1 = arith.constant 0 : i32
    return %c0_i32, %c0_i32_0 : i32, i32
  }
  func.func @transform_6(%arg0: i32) -> (i32, i32) {
    %c0_i32 = arith.constant 0 : i32
    %c0_i32_0 = arith.constant 0 : i32
    %c0_i32_1 = arith.constant 0 : i32
    return %c0_i32, %c0_i32_0 : i32, i32
  }
  func.func @transform_7(%arg0: i32) -> (i32, i32) {
    %c0_i32 = arith.constant 0 : i32
    %c0_i32_0 = arith.constant 0 : i32
    %c0_i32_1 = arith.constant 0 : i32
    return %c0_i32, %c0_i32_0 : i32, i32
  }
  func.func @transform_8(%arg0: i32) -> (i32, i32) {
    %c0_i32 = arith.constant 0 : i32
    %c0_i32_0 = arith.constant 0 : i32
    %c0_i32_1 = arith.constant 0 : i32
    return %c0_i32, %c0_i32_0 : i32, i32
  }
  func.func @transform_9(%arg0: i32) -> (i32, i32) {
    %c0_i32 = arith.constant 0 : i32
    %c0_i32_0 = arith.constant 0 : i32
    %c0_i32_1 = arith.constant 0 : i32
    return %c0_i32, %c0_i32_0 : i32, i32
  }
  func.func @transform_10(%arg0: i32) -> (i32, i32) {
    %c0_i32 = arith.constant 0 : i32
    %c0_i32_0 = arith.constant 0 : i32
    %c0_i32_1 = arith.constant 0 : i32
    return %c0_i32, %c0_i32_0 : i32, i32
  }
  func.func @transform_11(%arg0: i32) -> (i32, i32) {
    %c0_i32 = arith.constant 0 : i32
    %c0_i32_0 = arith.constant 0 : i32
    %c0_i32_1 = arith.constant 0 : i32
    return %c0_i32, %c0_i32_0 : i32, i32
  }
  func.func @transform_12(%arg0: i32) -> (i32, i32) {
    %c0_i32 = arith.constant 0 : i32
    %c0_i32_0 = arith.constant 0 : i32
    %c0_i32_1 = arith.constant 0 : i32
    return %c0_i32, %c0_i32_0 : i32, i32
  }
  func.func @transform_13(%arg0: i32) -> (i32, i32) {
    %c0_i32 = arith.constant 0 : i32
    %c0_i32_0 = arith.constant 0 : i32
    %c0_i32_1 = arith.constant 0 : i32
    return %c0_i32, %c0_i32_0 : i32, i32
  }
  func.func @transform_14(%arg0: i32) -> (i32, i32) {
    %c0_i32 = arith.constant 0 : i32
    %c0_i32_0 = arith.constant 0 : i32
    %c0_i32_1 = arith.constant 0 : i32
    return %c0_i32, %c0_i32_0 : i32, i32
  }
  func.func @transform_15(%arg0: i32) -> (i32, i32, i32) {
    %c0_i32 = arith.constant 0 : i32
    %c0_i32_0 = arith.constant 0 : i32
    %c0_i32_1 = arith.constant 0 : i32
    return %arg0, %c0_i32, %c0_i32_0 : i32, i32, i32
  }
}

</mosaic_0001>

<bundles_post_ra>
// kernel: gcn_forward.1
= control target key start
LH: loop header
LB: loop body
LE: loop exit
PB: predicated region body
PF: predicated region fallthrough
CT: control target
= control target key end

     0   :  { %s4066_s18 = smov 0   ;;  %s4946_s0 = inlined_call_operand.vmem [shape: f32[2,256,256], index: 0, kind: input, shape index: {}]   ;;  %s4947_s1 = inlined_call_operand.vmem [shape: f32[2,256,128], index: 1, kind: input, shape index: {}]   ;;  %s4948_s2 = inlined_call_operand.vmem [shape: f32[16,256], index: 2, kind: input, shape index: {}]   ;;  %s4949_s3 = inlined_call_operand.vmem [shape: f32[128,128], index: 3, kind: input, shape index: {}]   ;;  %s4950_s4 = inlined_call_operand.vmem [shape: f32[128,128], index: 4, kind: input, shape index: {}]   ;;  %s4951_s5 = inlined_call_operand.vmem [shape: f32[3,128], index: 5, kind: input, shape index: {}]   ;;  %s4952_s6 = inlined_call_operand.vmem [shape: f32[128,128], index: 6, kind: input, shape index: {}]   ;;  %s4953_s7 = inlined_call_operand.vmem [shape: f32[128,128], index: 7, kind: input, shape index: {}]   ;;  %s4954_s8 = inlined_call_operand.vmem [shape: f32[3,128], index: 8, kind: input, shape index: {}]   ;;  %s4955_s9 = inlined_call_operand.vmem [shape: f32[128,128], index: 9, kind: input, shape index: {}]   ;;  %s4956_s10 = inlined_call_operand.vmem [shape: f32[1,128], index: 10, kind: input, shape index: {}]   ;;  %s4957_s11 = inlined_call_operand.vmem [shape: f32[128,128], index: 11, kind: input, shape index: {}]   ;;  %s4958_s12 = inlined_call_operand.vmem [shape: f32[1,128], index: 12, kind: input, shape index: {}]   ;;  %s4959_s13 = inlined_call_operand.vmem [shape: f32[128,128], index: 13, kind: input, shape index: {}]   ;;  %s4960_s14 = inlined_call_operand.vmem [shape: f32[1,128], index: 14, kind: input, shape index: {}]   ;;  %s4961_s15 = inlined_call_operand.vmem [shape: f32[2,16,128], index: 15, kind: output, shape index: {}]  }
   0x1 LB: > { %s2825_s19 = sadd.s32 4294967295, %s3983_s18   ;;  %p2829_p0 = scmp.ge.s32.totalorder %s3983_s18, 1  ;;  %s3983_s18 = sphi %s4066_s18, %s25_s18  }
   0x2   : > { %p447_p1 = scmp.lt.s32.totalorder %s3983_s18, 3 }
   0x4   : > { %p448_p2 = pnand %p2829_p0, %p447_p1 }
   0x5   : > { %v611_v0 = vld [vmem:[%s4949_s3] sm:$0xff] (!%p448_p2)  ;;  %v612_v1 = vld [vmem:[%s4949_s3 + $0x8] sm:$0xff] (!%p448_p2)  ;;  %v613_v2 = vld [vmem:[%s4949_s3 + $0x10] sm:$0xff] (!%p448_p2)  ;;  %p500_p3 = scmp.lt.s32.totalorder (!%p448_p2), %s2825_s19, 1  ;;  %v3985_v56 = vmov (!%p448_p2), 0.0|0.0  }
   0x6   : > { %451 = sbr.rel (%p448_p2) target bundleno = 2532 (0x9e4), region = 80  ;;  %v3553_v3 = vpack.c.bf16 (!%p448_p2), %v612_v1, %v611_v0  ;;  %v614_v4 = vld [vmem:[%s4949_s3 + $0x18] sm:$0xff] (!%p448_p2)  ;;  %v615_v6 = vld [vmem:[%s4949_s3 + $0x20] sm:$0xff] (!%p448_p2)  ;;  %v616_v7 = vld [vmem:[%s4949_s3 + $0x28] sm:$0xff] (!%p448_p2)  ;;  %3585 = vmatprep.subr.bf16.mxu1 (!%p448_p2), %v3985_v56 }
   0x7   : > { %v3557_v5 = vpack.c.bf16 (!%p448_p2), %v614_v4, %v613_v2  ;;  %v3561_v8 = vpack.c.bf16 (!%p448_p2), %v616_v7, %v615_v6  ;;  %v617_v9 = vld [vmem:[%s4949_s3 + $0x30] sm:$0xff] (!%p448_p2)  ;;  %v618_v10 = vld [vmem:[%s4949_s3 + $0x38] sm:$0xff] (!%p448_p2)  ;;  %v619_v13 = vld [vmem:[%s4949_s3 + $0x40] sm:$0xff] (!%p448_p2) }
   0x8   : > { %3554 = vmatprep.subr.bf16.mxu0 (!%p448_p2), %v3553_v3  ;;  %v3565_v12 = vpack.c.bf16 (!%p448_p2), %v618_v10, %v617_v9  ;;  %v620_v14 = vld [vmem:[%s4949_s3 + $0x48] sm:$0xff] (!%p448_p2)  ;;  %v621_v16 = vld [vmem:[%s4949_s3 + $0x50] sm:$0xff] (!%p448_p2)  ;;  %v622_v17 = vld [vmem:[%s4949_s3 + $0x58] sm:$0xff] (!%p448_p2) }
   0x9   : > { %3556 = vmatpush3.bf16.msra.mxu0 (!%p448_p2), %v3553_v3  ;;  %v3569_v15 = vpack.c.bf16 (!%p448_p2), %v620_v14, %v619_v13  ;;  %v3573_v18 = vpack.c.bf16 (!%p448_p2), %v622_v17, %v621_v16  ;;  %v623_v19 = vld [vmem:[%s4949_s3 + $0x60] sm:$0xff] (!%p448_p2)  ;;  %v624_v20 = vld [vmem:[%s4949_s3 + $0x68] sm:$0xff] (!%p448_p2)  ;;  %v625_v22 = vld [vmem:[%s4949_s3 + $0x70] sm:$0xff] (!%p448_p2) }
   0xa   : > { %3558 = vmatprep.subr.bf16.mxu0 (!%p448_p2), %v3557_v5  ;;  %v3577_v21 = vpack.c.bf16 (!%p448_p2), %v624_v20, %v623_v19  ;;  %v626_v23 = vld [vmem:[%s4949_s3 + $0x78] sm:$0xff] (!%p448_p2) }
   0xb   : > { %v3581_v24 = vpack.c.bf16 (!%p448_p2), %v626_v23, %v625_v22 }
   0xd   : > { %s4963_s19 = smov (!%p500_p3, %s2825_s19), 1  ;;  %3560 = vmatpush3.bf16.msra.mxu0 %v3557_v5 }
   0xe   : > { %s2842_s17 = sshll.u32 %s4963_s19, 8  ;;  %3562 = vmatprep.subr.bf16.mxu0 %v3561_v8  ;;  %s2841_s16 = sshll.u32 %s4963_s19, 9 }
   0xf   : > { %s4098_s22 = scalar_lea.vmem %s4947_s1, %s2842_s17  ;;  %s4167_s21 = scalar_lea.vmem %s4946_s0, %s2841_s16 }
  0x10   : > { %v579_v11 = vld [vmem:[%s4098_s22] sm:$0xff]  ;;  %v580_v25 = vld [vmem:[%s4098_s22 + $0x8] sm:$0xff]  ;;  %v581_v26 = vld [vmem:[%s4098_s22 + $0x10] sm:$0xff]  ;;  %s2843_s29 = sshll.u32 %s4963_s19, 4 }
  0x11   : > { %3160 = vmatprep.mubr.f32.mxu0 %v579_v11  ;;  %3564 = vmatpush3.bf16.msra.mxu0 %v3561_v8  ;;  %v582_v27 = vld [vmem:[%s4098_s22 + $0x18] sm:$0xff]  ;;  %v583_v28 = vld [vmem:[%s4098_s22 + $0x20] sm:$0xff]  ;;  %v584_v29 = vld [vmem:[%s4098_s22 + $0x28] sm:$0xff] }
  0x12   : > { %3566 = vmatprep.subr.bf16.mxu0 %v3565_v12  ;;  %v585_v30 = vld [vmem:[%s4098_s22 + $0x30] sm:$0xff]  ;;  %v586_v31 = vld [vmem:[%s4098_s22 + $0x38] sm:$0xff]  ;;  %v587_v32 = vld [vmem:[%s4098_s22 + $0x40] sm:$0xff] }
  0x13   : > { %v588_v33 = vld [vmem:[%s4098_s22 + $0x48] sm:$0xff]  ;;  %v589_v34 = vld [vmem:[%s4098_s22 + $0x50] sm:$0xff]  ;;  %v590_v35 = vld [vmem:[%s4098_s22 + $0x58] sm:$0xff] }
  0x14   : > { %v591_v36 = vld [vmem:[%s4098_s22 + $0x60] sm:$0xff]  ;;  %v592_v37 = vld [vmem:[%s4098_s22 + $0x68] sm:$0xff]  ;;  %v593_v38 = vld [vmem:[%s4098_s22 + $0x70] sm:$0xff] }
  0x15   : > { %3568 = vmatpush3.bf16.msra.mxu0 %v3565_v12  ;;  %v594_v39 = vld [vmem:[%s4098_s22 + $0x78] sm:$0xff]  ;;  %v595_v40 = vld [vmem:[%s4098_s22 + $0x80] sm:$0xff]  ;;  %v596_v41 = vld [vmem:[%s4098_s22 + $0x88] sm:$0xff] }
  0x16   : > { %3570 = vmatprep.subr.bf16.mxu0 %v3569_v15  ;;  %v597_v42 = vld [vmem:[%s4098_s22 + $0x90] sm:$0xff]  ;;  %v598_v43 = vld [vmem:[%s4098_s22 + $0x98] sm:$0xff]  ;;  %v599_v44 = vld [vmem:[%s4098_s22 + $0xa0] sm:$0xff] }
  0x17   : > { %v600_v45 = vld [vmem:[%s4098_s22 + $0xa8] sm:$0xff]  ;;  %v601_v46 = vld [vmem:[%s4098_s22 + $0xb0] sm:$0xff]  ;;  %v602_v47 = vld [vmem:[%s4098_s22 + $0xb8] sm:$0xff] }
  0x18   : > { %v603_v48 = vld [vmem:[%s4098_s22 + $0xc0] sm:$0xff]  ;;  %v604_v49 = vld [vmem:[%s4098_s22 + $0xc8] sm:$0xff]  ;;  %v605_v50 = vld [vmem:[%s4098_s22 + $0xd0] sm:$0xff] }
  0x19   : > { %3572 = vmatpush3.bf16.msra.mxu0 %v3569_v15  ;;  %v606_v51 = vld [vmem:[%s4098_s22 + $0xd8] sm:$0xff]  ;;  %v607_v52 = vld [vmem:[%s4098_s22 + $0xe0] sm:$0xff]  ;;  %v608_v53 = vld [vmem:[%s4098_s22 + $0xe8] sm:$0xff] }
  0x1a   : > { %3574 = vmatprep.subr.bf16.mxu0 %v3573_v18  ;;  %v609_v54 = vld [vmem:[%s4098_s22 + $0xf0] sm:$0xff]  ;;  %v610_v55 = vld [vmem:[%s4098_s22 + $0xf8] sm:$0xff]  ;;  %v4170_v57 = vld [vmem:[%s4167_s21 + $0x8] sm:$0xff]  ;;  %s514_s22 = scalar_lea.vmem %s4961_s15, %s2843_s29 }
  0x1b   : > { %916 = vmatprep.mubr.f32.mxu1 %v4170_v57 }
  0x1d   : > { %3576 = vmatpush3.bf16.msra.mxu0 %v3573_v18 }
  0x1e   : > { %3578 = vmatprep.subr.bf16.mxu0 %v3577_v21 }
  0x21   : > { %3580 = vmatpush3.bf16.msra.mxu0 %v3577_v21 }
  0x22   : > { %3582 = vmatprep.subr.bf16.mxu0 %v3581_v24 }
  0x25   : > { %3584 = vmatpush3.bf16.msra.mxu0 %v3581_v24 }
  0x28   : > { %3161 = vmatmul.mubr.f32.vlgmr.msra.gmra.mrb[0].mxu0 %v580_v25 }
  0x29   : > { %3163 = vmatprep.mubr.f32.mxu0 %v581_v26 }
  0x2c   : > { %3164 = vmatmul.mubr.f32.gmra.mrb[2].mxu0 %v582_v27 }
  0x2d   : > { %3166 = vmatprep.mubr.f32.mxu0 %v583_v28 }
  0x30   : > { %3167 = vmatmul.mubr.f32.gmra.mrb[4].mxu0 %v584_v29 }
  0x31   : > { %3169 = vmatprep.mubr.f32.mxu0 %v585_v30 }
  0x34   : > { %3170 = vmatmul.mubr.f32.gmra.mrb[6].mxu0 %v586_v31 }
  0x35   : > { %3172 = vmatprep.mubr.f32.mxu0 %v587_v32 }
  0x38   : > { %3173 = vmatmul.mubr.f32.gmra.mrb[8].mxu0 %v588_v33 }
  0x39   : > { %3175 = vmatprep.mubr.f32.mxu0 %v589_v34 }
  0x3c   : > { %3176 = vmatmul.mubr.f32.gmra.mrb[10].mxu0 %v590_v35 }
  0x3d   : > { %3178 = vmatprep.mubr.f32.mxu0 %v591_v36 }
  0x40   : > { %3179 = vmatmul.mubr.f32.gmra.mrb[12].mxu0 %v592_v37 }
  0x41   : > { %3181 = vmatprep.mubr.f32.mxu0 %v593_v38 }
  0x44   : > { %3182 = vmatmul.mubr.f32.gmra.mrb[14].mxu0 %v594_v39 }
  0x45   : > { %3184 = vmatprep.mubr.f32.mxu0 %v595_v40 }
  0x48   : > { %3185 = vmatmul.mubr.f32.gmra.mrb[16].mxu0 %v596_v41 }
  0x49   : > { %3187 = vmatprep.mubr.f32.mxu0 %v597_v42  ;;  %v1077_v42 = vld [vmem:[%s4950_s4] sm:$0xff] }
  0x4c   : > { %3188 = vmatmul.mubr.f32.gmra.mrb[18].mxu0 %v598_v43  ;;  %v1078_v43 = vld [vmem:[%s4950_s4 + $0x8] sm:$0xff] }
  0x4d   : > { %3190 = vmatprep.mubr.f32.mxu0 %v599_v44  ;;  %v1079_v44 = vld [vmem:[%s4950_s4 + $0x10] sm:$0xff] }
  0x50   : > { %3191 = vmatmul.mubr.f32.gmra.mrb[20].mxu0 %v600_v45  ;;  %v515_v45 = vld [vmem:[%s4167_s21] sm:$0xff] }
  0x51   : > { %3193 = vmatprep.mubr.f32.mxu0 %v601_v46  ;;  %v3633_v46 = vpack.c.bf16 %v1078_v43, %v1077_v42  ;;  %v558_v42 = vld [vmem:[%s4167_s21 + $0x158] sm:$0xff]  ;;  %v557_v43 = vld [vmem:[%s4167_s21 + $0x150] sm:$0xff] }
  0x53   : > { %3634 = vmatprep.subr.bf16.mxu0 %v3633_v46 }
  0x54   : > { %3194 = vmatmul.mubr.f32.gmra.mrb[22].mxu0 %v602_v47  ;;  %v1080_v47 = vld [vmem:[%s4950_s4 + $0x18] sm:$0xff] }
  0x55   : > { %3196 = vmatprep.mubr.f32.mxu0 %v603_v48  ;;  %v518_v48 = vld [vmem:[%s4167_s21 + $0x18] sm:$0xff]  ;;  %3636 = vmatpush3.bf16.msra.mxu0 %v3633_v46  ;;  %v560_v46 = vld [vmem:[%s4167_s21 + $0x168] sm:$0xff] }
  0x58   : > { %3197 = vmatmul.mubr.f32.gmra.mrb[24].mxu0 %v604_v49  ;;  %v3637_v49 = vpack.c.bf16 %v1080_v47, %v1079_v44  ;;  %v1091_v44 = vld [vmem:[%s4950_s4 + $0x70] sm:$0xff] }
  0x59   : > { %3199 = vmatprep.mubr.f32.mxu0 %v605_v50  ;;  %v1081_v50 = vld [vmem:[%s4950_s4 + $0x20] sm:$0xff] }
  0x5a   : > { %3638 = vmatprep.subr.bf16.mxu0 %v3637_v49 }
  0x5b   : > { %3640 = vmatpush3.bf16.msra.mxu0 %v3637_v49  ;;  %v562_v49 = vld [vmem:[%s4167_s21 + $0x178] sm:$0xff] }
  0x5c   : > { %3200 = vmatmul.mubr.f32.gmra.mrb[26].mxu0 %v606_v51  ;;  %v1082_v51 = vld [vmem:[%s4950_s4 + $0x28] sm:$0xff] }
  0x5d   : > { %3202 = vmatprep.mubr.f32.mxu0 %v607_v52  ;;  %v517_v52 = vld [vmem:[%s4167_s21 + $0x10] sm:$0xff] }
  0x60   : > { %3203 = vmatmul.mubr.f32.gmra.mrb[28].mxu0 %v608_v53  ;;  %v3641_v53 = vpack.c.bf16 %v1082_v51, %v1081_v50  ;;  %v561_v50 = vld [vmem:[%s4167_s21 + $0x170] sm:$0xff]  ;;  %v564_v51 = vld [vmem:[%s4167_s21 + $0x188] sm:$0xff] }
  0x61   : > { %3205 = vmatprep.mubr.f32.mxu0 %v609_v54  ;;  %v520_v54 = vld [vmem:[%s4167_s21 + $0x28] sm:$0xff] }
  0x62   : > { %3642 = vmatprep.subr.bf16.mxu0 %v3641_v53 }
  0x63   : > { %3644 = vmatpush3.bf16.msra.mxu0 %v3641_v53  ;;  %v566_v53 = vld [vmem:[%s4167_s21 + $0x198] sm:$0xff] }
  0x64   : > { %3206 = vmatmul.mubr.f32.gmra.mrb[30].mxu0 %v610_v55  ;;  %v1083_v55 = vld [vmem:[%s4950_s4 + $0x30] sm:$0xff] }
  0xfb   : > { %v3162_v58 = vpop.f32.mrb[0].mxu0 }
  0xfc   : > { %v693_v59 = vpop.f32.mrb[1].mxu0 }
  0xfd   : > { %v3586_v60 = vpack.c.bf16 %v3162_v58, %v693_v59  ;;  %v1084_v58 = vld [vmem:[%s4950_s4 + $0x38] sm:$0xff]  ;;  %v519_v59 = vld [vmem:[%s4167_s21 + $0x20] sm:$0xff] }
  0xff   : > { %v3165_v61 = vpop.f32.mrb[2].mxu0  ;;  %3587 = vmatpush1.bf16.msra.mxu1 %v3586_v60  ;;  %v3645_v60 = vpack.c.bf16 %v1084_v58, %v1083_v55  ;;  %v568_v55 = vld [vmem:[%s4167_s21 + $0x1a8] sm:$0xff]  ;;  %v567_v58 = vld [vmem:[%s4167_s21 + $0x1a0] sm:$0xff] }
 0x100   : > { %v703_v62 = vpop.f32.mrb[3].mxu0  ;;  %3588 = vmatprep.subr.bf16.mxu1 %v3985_v56 }
 0x101   : > { %v3589_v63 = vpack.c.bf16 %v3165_v61, %v703_v62  ;;  %v522_v61 = vld [vmem:[%s4167_s21 + $0x38] sm:$0xff]  ;;  %v1085_v62 = vld [vmem:[%s4950_s4 + $0x40] sm:$0xff]  ;;  %3646 = vmatprep.subr.bf16.mxu0 %v3645_v60 }
 0x102   : > { %3648 = vmatpush3.bf16.msra.mxu0 %v3645_v60  ;;  %v569_v60 = vld [vmem:[%s4167_s21 + $0x1b0] sm:$0xff] }
 0x103   : > { %v3168_v0 = vpop.f32.mrb[4].mxu0  ;;  %3590 = vmatpush1.bf16.msra.mxu1 %v3589_v63  ;;  %v1086_v63 = vld [vmem:[%s4950_s4 + $0x48] sm:$0xff] }
 0x104   : > { %v713_v1 = vpop.f32.mrb[5].mxu0  ;;  %3591 = vmatprep.subr.bf16.mxu1 %v3985_v56 }
 0x105   : > { %v3592_v2 = vpack.c.bf16 %v3168_v0, %v713_v1  ;;  %v521_v0 = vld [vmem:[%s4167_s21 + $0x30] sm:$0xff]  ;;  %v3649_v1 = vpack.c.bf16 %v1086_v63, %v1085_v62  ;;  %v571_v62 = vld [vmem:[%s4167_s21 + $0x1c0] sm:$0xff]  ;;  %v574_v63 = vld [vmem:[%s4167_s21 + $0x1d8] sm:$0xff] }
 0x107   : > { %v3171_v3 = vpop.f32.mrb[6].mxu0  ;;  %3593 = vmatpush1.bf16.msra.mxu1 %v3592_v2  ;;  %v524_v2 = vld [vmem:[%s4167_s21 + $0x48] sm:$0xff]  ;;  %3650 = vmatprep.subr.bf16.mxu0 %v3649_v1 }
 0x108   : > { %v723_v4 = vpop.f32.mrb[7].mxu0  ;;  %3594 = vmatprep.subr.bf16.mxu1 %v3985_v56  ;;  %3652 = vmatpush3.bf16.msra.mxu0 %v3649_v1  ;;  %v576_v1 = vld [vmem:[%s4167_s21 + $0x1e8] sm:$0xff] }
 0x109   : > { %v3595_v5 = vpack.c.bf16 %v3171_v3, %v723_v4  ;;  %v1087_v3 = vld [vmem:[%s4950_s4 + $0x50] sm:$0xff]  ;;  %v1088_v4 = vld [vmem:[%s4950_s4 + $0x58] sm:$0xff] }
 0x10b   : > { %v3174_v6 = vpop.f32.mrb[8].mxu0  ;;  %3596 = vmatpush1.bf16.msra.mxu1 %v3595_v5  ;;  %v523_v5 = vld [vmem:[%s4167_s21 + $0x40] sm:$0xff] }
 0x10c   : > { %v733_v7 = vpop.f32.mrb[9].mxu0  ;;  %3597 = vmatprep.subr.bf16.mxu1 %v3985_v56 }
 0x10d   : > { %v3598_v8 = vpack.c.bf16 %v3174_v6, %v733_v7  ;;  %v3653_v6 = vpack.c.bf16 %v1088_v4, %v1087_v3  ;;  %v526_v7 = vld [vmem:[%s4167_s21 + $0x58] sm:$0xff]  ;;  %v577_v4 = vld [vmem:[%s4167_s21 + $0x1f0] sm:$0xff] }
 0x10e   : > { %v578_v3 = vld [vmem:[%s4167_s21 + $0x1f8] sm:$0xff] }
 0x10f   : > { %v3177_v9 = vpop.f32.mrb[10].mxu0  ;;  %3599 = vmatpush1.bf16.msra.mxu1 %v3598_v8  ;;  %v1089_v8 = vld [vmem:[%s4950_s4 + $0x60] sm:$0xff]  ;;  %3654 = vmatprep.subr.bf16.mxu0 %v3653_v6 }
 0x110   : > { %v743_v10 = vpop.f32.mrb[11].mxu0  ;;  %3600 = vmatprep.subr.bf16.mxu1 %v3985_v56  ;;  %3656 = vmatpush3.bf16.msra.mxu0 %v3653_v6  ;;  %v1492_v6 = vld [vmem:[%s4952_s6 + $0x8] sm:$0xff] }
 0x111   : > { %v3601_v11 = vpack.c.bf16 %v3177_v9, %v743_v10  ;;  %v1090_v9 = vld [vmem:[%s4950_s4 + $0x68] sm:$0xff]  ;;  %v525_v10 = vld [vmem:[%s4167_s21 + $0x50] sm:$0xff] }
 0x113   : > { %v3180_v12 = vpop.f32.mrb[12].mxu0  ;;  %3602 = vmatpush1.bf16.msra.mxu1 %v3601_v11  ;;  %v3657_v11 = vpack.c.bf16 %v1090_v9, %v1089_v8  ;;  %v1493_v9 = vld [vmem:[%s4952_s6 + $0x10] sm:$0xff] }
 0x114   : > { %v753_v13 = vpop.f32.mrb[13].mxu0  ;;  %3603 = vmatprep.subr.bf16.mxu1 %v3985_v56 }
 0x115   : > { %v3604_v14 = vpack.c.bf16 %v3180_v12, %v753_v13  ;;  %v528_v12 = vld [vmem:[%s4167_s21 + $0x68] sm:$0xff]  ;;  %v527_v13 = vld [vmem:[%s4167_s21 + $0x60] sm:$0xff]  ;;  %3658 = vmatprep.subr.bf16.mxu0 %v3657_v11 }
 0x116   : > { %3660 = vmatpush3.bf16.msra.mxu0 %v3657_v11 }
 0x117   : > { %v3183_v15 = vpop.f32.mrb[14].mxu0  ;;  %3605 = vmatpush1.bf16.msra.mxu1 %v3604_v14  ;;  %v530_v14 = vld [vmem:[%s4167_s21 + $0x78] sm:$0xff] }
 0x118   : > { %v763_v16 = vpop.f32.mrb[15].mxu0  ;;  %3606 = vmatprep.subr.bf16.mxu1 %v3985_v56 }
 0x119   : > { %v3607_v17 = vpack.c.bf16 %v3183_v15, %v763_v16  ;;  %v529_v15 = vld [vmem:[%s4167_s21 + $0x70] sm:$0xff]  ;;  %v532_v16 = vld [vmem:[%s4167_s21 + $0x88] sm:$0xff] }
 0x11b   : > { %v3186_v18 = vpop.f32.mrb[16].mxu0  ;;  %3608 = vmatpush1.bf16.msra.mxu1 %v3607_v17  ;;  %v531_v17 = vld [vmem:[%s4167_s21 + $0x80] sm:$0xff] }
 0x11c   : > { %v773_v19 = vpop.f32.mrb[17].mxu0  ;;  %3609 = vmatprep.subr.bf16.mxu1 %v3985_v56 }
 0x11d   : > { %v3610_v20 = vpack.c.bf16 %v3186_v18, %v773_v19  ;;  %v534_v18 = vld [vmem:[%s4167_s21 + $0x98] sm:$0xff]  ;;  %v533_v19 = vld [vmem:[%s4167_s21 + $0x90] sm:$0xff] }
 0x11f   : > { %v3189_v21 = vpop.f32.mrb[18].mxu0  ;;  %3611 = vmatpush1.bf16.msra.mxu1 %v3610_v20  ;;  %v536_v20 = vld [vmem:[%s4167_s21 + $0xa8] sm:$0xff] }
 0x120   : > { %v783_v22 = vpop.f32.mrb[19].mxu0  ;;  %3612 = vmatprep.subr.bf16.mxu1 %v3985_v56 }
 0x121   : > { %v3613_v23 = vpack.c.bf16 %v3189_v21, %v783_v22  ;;  %v535_v21 = vld [vmem:[%s4167_s21 + $0xa0] sm:$0xff]  ;;  %v538_v22 = vld [vmem:[%s4167_s21 + $0xb8] sm:$0xff] }
 0x123   : > { %v3192_v24 = vpop.f32.mrb[20].mxu0  ;;  %3614 = vmatpush1.bf16.msra.mxu1 %v3613_v23  ;;  %v537_v23 = vld [vmem:[%s4167_s21 + $0xb0] sm:$0xff] }
 0x124   : > { %v793_v25 = vpop.f32.mrb[21].mxu0  ;;  %3615 = vmatprep.subr.bf16.mxu1 %v3985_v56 }
 0x125   : > { %v3616_v26 = vpack.c.bf16 %v3192_v24, %v793_v25  ;;  %v540_v24 = vld [vmem:[%s4167_s21 + $0xc8] sm:$0xff]  ;;  %v539_v25 = vld [vmem:[%s4167_s21 + $0xc0] sm:$0xff] }
 0x127   : > { %v3195_v27 = vpop.f32.mrb[22].mxu0  ;;  %3617 = vmatpush1.bf16.msra.mxu1 %v3616_v26  ;;  %v542_v26 = vld [vmem:[%s4167_s21 + $0xd8] sm:$0xff] }
 0x128   : > { %v803_v28 = vpop.f32.mrb[23].mxu0  ;;  %3618 = vmatprep.subr.bf16.mxu1 %v3985_v56 }
 0x129   : > { %v3619_v29 = vpack.c.bf16 %v3195_v27, %v803_v28  ;;  %v541_v27 = vld [vmem:[%s4167_s21 + $0xd0] sm:$0xff]  ;;  %v544_v28 = vld [vmem:[%s4167_s21 + $0xe8] sm:$0xff] }
 0x12b   : > { %v3198_v30 = vpop.f32.mrb[24].mxu0  ;;  %3620 = vmatpush1.bf16.msra.mxu1 %v3619_v29  ;;  %v543_v29 = vld [vmem:[%s4167_s21 + $0xe0] sm:$0xff] }
 0x12c   : > { %v813_v31 = vpop.f32.mrb[25].mxu0  ;;  %3621 = vmatprep.subr.bf16.mxu1 %v3985_v56 }
 0x12d   : > { %v3622_v32 = vpack.c.bf16 %v3198_v30, %v813_v31  ;;  %v546_v30 = vld [vmem:[%s4167_s21 + $0xf8] sm:$0xff]  ;;  %v545_v31 = vld [vmem:[%s4167_s21 + $0xf0] sm:$0xff] }
 0x12f   : > { %v3201_v33 = vpop.f32.mrb[26].mxu0  ;;  %3623 = vmatpush1.bf16.msra.mxu1 %v3622_v32  ;;  %v548_v32 = vld [vmem:[%s4167_s21 + $0x108] sm:$0xff] }
 0x130   : > { %v823_v34 = vpop.f32.mrb[27].mxu0  ;;  %3624 = vmatprep.subr.bf16.mxu1 %v3985_v56 }
 0x131   : > { %v3625_v35 = vpack.c.bf16 %v3201_v33, %v823_v34  ;;  %v547_v33 = vld [vmem:[%s4167_s21 + $0x100] sm:$0xff]  ;;  %v550_v34 = vld [vmem:[%s4167_s21 + $0x118] sm:$0xff] }
 0x133   : > { %v3204_v36 = vpop.f32.mrb[28].mxu0  ;;  %3626 = vmatpush1.bf16.msra.mxu1 %v3625_v35  ;;  %v549_v35 = vld [vmem:[%s4167_s21 + $0x110] sm:$0xff] }
 0x134   : > { %v833_v37 = vpop.f32.mrb[29].mxu0  ;;  %3627 = vmatprep.subr.bf16.mxu1 %v3985_v56 }
 0x135   : > { %v3628_v38 = vpack.c.bf16 %v3204_v36, %v833_v37  ;;  %v552_v36 = vld [vmem:[%s4167_s21 + $0x128] sm:$0xff]  ;;  %v551_v37 = vld [vmem:[%s4167_s21 + $0x120] sm:$0xff] }
 0x137   : > { %v3207_v39 = vpop.f32.mrb[30].mxu0  ;;  %3629 = vmatpush1.bf16.msra.mxu1 %v3628_v38  ;;  %v554_v38 = vld [vmem:[%s4167_s21 + $0x138] sm:$0xff] }
 0x138   : > { %v843_v40 = vpop.f32.mrb[31].mxu0  ;;  %3630 = vmatprep.subr.bf16.mxu1 %v3985_v56 }
 0x139   : > { %v3631_v41 = vpack.c.bf16 %v3207_v39, %v843_v40  ;;  %v553_v39 = vld [vmem:[%s4167_s21 + $0x130] sm:$0xff]  ;;  %v556_v40 = vld [vmem:[%s4167_s21 + $0x148] sm:$0xff] }
 0x13b   : > { %3632 = vmatpush1.bf16.msra.mxu1 %v3631_v41  ;;  %v555_v41 = vld [vmem:[%s4167_s21 + $0x140] sm:$0xff] }
 0x13c   : > { %3697 = vmatprep.subr.bf16.mxu1 %v3985_v56 }
 0x13e   : > { %917 = vmatmul.mubr.f32.vlgmr.msra.gmra.mrb[0].mxu1 %v515_v45  ;;  %v1092_v45 = vld [vmem:[%s4950_s4 + $0x78] sm:$0xff] }
 0x13f   : > { %921 = vmatprep.mubr.f32.mxu1 %v518_v48  ;;  %v3661_v47 = vpack.c.bf16 %v1092_v45, %v1091_v44  ;;  %v559_v48 = vld [vmem:[%s4167_s21 + $0x160] sm:$0xff] }
 0x141   : > { %3662 = vmatprep.subr.bf16.mxu0 %v3661_v47 }
 0x142   : > { %922 = vmatmul.mubr.f32.gmra.mrb[2].mxu1 %v517_v52  ;;  %3664 = vmatpush3.bf16.msra.mxu0 %v3661_v47  ;;  %v563_v52 = vld [vmem:[%s4167_s21 + $0x180] sm:$0xff] }
 0x143   : > { %926 = vmatprep.mubr.f32.mxu1 %v520_v54  ;;  %v565_v54 = vld [vmem:[%s4167_s21 + $0x190] sm:$0xff] }
 0x146   : > { %927 = vmatmul.mubr.f32.gmra.mrb[4].mxu1 %v519_v59  ;;  %v570_v59 = vld [vmem:[%s4167_s21 + $0x1b8] sm:$0xff] }
 0x147   : > { %931 = vmatprep.mubr.f32.mxu1 %v522_v61  ;;  %v572_v61 = vld [vmem:[%s4167_s21 + $0x1c8] sm:$0xff] }
 0x14a   : > { %932 = vmatmul.mubr.f32.gmra.mrb[6].mxu1 %v521_v0  ;;  %v573_v0 = vld [vmem:[%s4167_s21 + $0x1d0] sm:$0xff] }
 0x14b   : > { %936 = vmatprep.mubr.f32.mxu1 %v524_v2  ;;  %v575_v2 = vld [vmem:[%s4167_s21 + $0x1e0] sm:$0xff] }
 0x14e   : > { %937 = vmatmul.mubr.f32.gmra.mrb[8].mxu1 %v523_v5  ;;  %v1491_v5 = vld [vmem:[%s4952_s6] sm:$0xff] }
 0x14f   : > { %941 = vmatprep.mubr.f32.mxu1 %v526_v7  ;;  %v3665_v7 = vpack.c.bf16 %v1492_v6, %v1491_v5  ;;  %v1503_v6 = vld [vmem:[%s4952_s6 + $0x60] sm:$0xff] }
 0x151   : > { %3666 = vmatprep.subr.bf16.mxu0 %v3665_v7 }
 0x152   : > { %942 = vmatmul.mubr.f32.gmra.mrb[10].mxu1 %v525_v10  ;;  %v1494_v10 = vld [vmem:[%s4952_s6 + $0x18] sm:$0xff] }
 0x153   : > { %946 = vmatprep.mubr.f32.mxu1 %v528_v12  ;;  %v3669_v11 = vpack.c.bf16 %v1494_v10, %v1493_v9 }
 0x156   : > { %947 = vmatmul.mubr.f32.gmra.mrb[12].mxu1 %v527_v13  ;;  %v1495_v13 = vld [vmem:[%s4952_s6 + $0x20] sm:$0xff] }
 0x157   : > { %951 = vmatprep.mubr.f32.mxu1 %v530_v14  ;;  %v1496_v14 = vld [vmem:[%s4952_s6 + $0x28] sm:$0xff] }
 0x15a   : > { %952 = vmatmul.mubr.f32.gmra.mrb[14].mxu1 %v529_v15 }
 0x15b   : > { %956 = vmatprep.mubr.f32.mxu1 %v532_v16  ;;  %v3673_v16 = vpack.c.bf16 %v1496_v14, %v1495_v13 }
 0x15e   : > { %957 = vmatmul.mubr.f32.gmra.mrb[16].mxu1 %v531_v17 }
 0x15f   : > { %961 = vmatprep.mubr.f32.mxu1 %v534_v18  ;;  %v1497_v18 = vld [vmem:[%s4952_s6 + $0x30] sm:$0xff] }
 0x162   : > { %962 = vmatmul.mubr.f32.gmra.mrb[18].mxu1 %v533_v19  ;;  %v1498_v19 = vld [vmem:[%s4952_s6 + $0x38] sm:$0xff] }
 0x163   : > { %966 = vmatprep.mubr.f32.mxu1 %v536_v20 }
 0x166   : > { %967 = vmatmul.mubr.f32.gmra.mrb[20].mxu1 %v535_v21  ;;  %v3677_v21 = vpack.c.bf16 %v1498_v19, %v1497_v18 }
 0x167   : > { %971 = vmatprep.mubr.f32.mxu1 %v538_v22 }
 0x16a   : > { %972 = vmatmul.mubr.f32.gmra.mrb[22].mxu1 %v537_v23  ;;  %v1499_v23 = vld [vmem:[%s4952_s6 + $0x40] sm:$0xff] }
 0x16b   : > { %976 = vmatprep.mubr.f32.mxu1 %v540_v24  ;;  %v1500_v24 = vld [vmem:[%s4952_s6 + $0x48] sm:$0xff] }
 0x16e   : > { %977 = vmatmul.mubr.f32.gmra.mrb[24].mxu1 %v539_v25 }
 0x16f   : > { %981 = vmatprep.mubr.f32.mxu1 %v542_v26  ;;  %v3681_v26 = vpack.c.bf16 %v1500_v24, %v1499_v23 }
 0x172   : > { %982 = vmatmul.mubr.f32.gmra.mrb[26].mxu1 %v541_v27 }
 0x173   : > { %986 = vmatprep.mubr.f32.mxu1 %v544_v28 }
 0x176   : > { %987 = vmatmul.mubr.f32.gmra.mrb[28].mxu1 %v543_v29 }
 0x177   : > { %991 = vmatprep.mubr.f32.mxu1 %v546_v30 }
 0x17a   : > { %992 = vmatmul.mubr.f32.gmra.mrb[30].mxu1 %v545_v31 }
 0x17b   : > { %996 = vmatprep.mubr.f32.mxu1 %v548_v32 }
 0x17e   : > { %997 = vmatmul.mubr.f32.gmra.mrb[32].mxu1 %v547_v33 }
 0x17f   : > { %1001 = vmatprep.mubr.f32.mxu1 %v550_v34 }
 0x182   : > { %1002 = vmatmul.mubr.f32.gmra.mrb[34].mxu1 %v549_v35 }
 0x183   : > { %1006 = vmatprep.mubr.f32.mxu1 %v552_v36 }
 0x186   : > { %1007 = vmatmul.mubr.f32.gmra.mrb[36].mxu1 %v551_v37 }
 0x187   : > { %1011 = vmatprep.mubr.f32.mxu1 %v554_v38 }
 0x18a   : > { %1012 = vmatmul.mubr.f32.gmra.mrb[38].mxu1 %v553_v39 }
 0x18b   : > { %1016 = vmatprep.mubr.f32.mxu1 %v556_v40 }
 0x18e   : > { %1017 = vmatmul.mubr.f32.gmra.mrb[40].mxu1 %v555_v41 }
 0x18f   : > { %1021 = vmatprep.mubr.f32.mxu1 %v558_v42 }
 0x192   : > { %1022 = vmatmul.mubr.f32.gmra.mrb[42].mxu1 %v557_v43 }
 0x193   : > { %1026 = vmatprep.mubr.f32.mxu1 %v560_v46 }
 0x196   : > { %1027 = vmatmul.mubr.f32.gmra.mrb[44].mxu1 %v559_v48 }
 0x197   : > { %1031 = vmatprep.mubr.f32.mxu1 %v562_v49 }
 0x19a   : > { %1032 = vmatmul.mubr.f32.gmra.mrb[46].mxu1 %v561_v50 }
 0x19b   : > { %1036 = vmatprep.mubr.f32.mxu1 %v564_v51 }
 0x19e   : > { %1037 = vmatmul.mubr.f32.gmra.mrb[48].mxu1 %v563_v52 }
 0x19f   : > { %1041 = vmatprep.mubr.f32.mxu1 %v566_v53 }
 0x1a2   : > { %1042 = vmatmul.mubr.f32.gmra.mrb[50].mxu1 %v565_v54 }
 0x1a3   : > { %1046 = vmatprep.mubr.f32.mxu1 %v568_v55 }
 0x1a6   : > { %1047 = vmatmul.mubr.f32.gmra.mrb[52].mxu1 %v567_v58 }
 0x1a7   : > { %1051 = vmatprep.mubr.f32.mxu1 %v570_v59 }
 0x1aa   : > { %1052 = vmatmul.mubr.f32.gmra.mrb[54].mxu1 %v569_v60 }
 0x1ab   : > { %1056 = vmatprep.mubr.f32.mxu1 %v572_v61 }
 0x1ae   : > { %1057 = vmatmul.mubr.f32.gmra.mrb[56].mxu1 %v571_v62 }
 0x1af   : > { %1061 = vmatprep.mubr.f32.mxu1 %v574_v63 }
 0x1b2   : > { %1062 = vmatmul.mubr.f32.gmra.mrb[58].mxu1 %v573_v0 }
 0x1b3   : > { %1066 = vmatprep.mubr.f32.mxu1 %v576_v1  ;;  %v1501_v1 = vld [vmem:[%s4952_s6 + $0x50] sm:$0xff] }
 0x1b6   : > { %1067 = vmatmul.mubr.f32.gmra.mrb[60].mxu1 %v575_v2  ;;  %v1502_v2 = vld [vmem:[%s4952_s6 + $0x58] sm:$0xff] }
 0x1b7   : > { %1071 = vmatprep.mubr.f32.mxu1 %v578_v3  ;;  %v3685_v3 = vpack.c.bf16 %v1502_v2, %v1501_v1 }
 0x1ba   : > { %1072 = vmatmul.mubr.f32.gmra.mrb[62].mxu1 %v577_v4 }
 0x1bb   : > { %1796 = vmatprep.mubr.f32.mxu1 %v4170_v57 }
 0x211   : > { %v918_v8 = vpop.f32.mrb[0].mxu1 }
 0x212   : > { %v920_v57 = vpop.f32.mrb[1].mxu1  ;;  %3240 = vmatprep.mubr.f32.mxu0 %v918_v8 }
 0x213   : > { %v1505_v57 = vld [vmem:[%s4952_s6 + $0x70] sm:$0xff] }
 0x215   : > { %v923_v12 = vpop.f32.mrb[2].mxu1 }
 0x216   : > { %v925_v15 = vpop.f32.mrb[3].mxu1  ;;  %3241 = vmatmul.mubr.f32.vlgmr.msra.gmra.mrb[32].mxu0 %v923_v12 }
 0x217   : > { %3668 = vmatpush3.bf16.msra.mxu0 %v3665_v7  ;;  %v1504_v7 = vld [vmem:[%s4952_s6 + $0x68] sm:$0xff] }
 0x218   : > { %3670 = vmatprep.subr.bf16.mxu0 %v3669_v11  ;;  %v3689_v8 = vpack.c.bf16 %v1504_v7, %v1503_v6 }
 0x219   : > { %v928_v17 = vpop.f32.mrb[4].mxu1 }
 0x21a   : > { %v930_v20 = vpop.f32.mrb[5].mxu1  ;;  %3243 = vmatprep.mubr.f32.mxu0 %v928_v17 }
 0x21b   : > { %3672 = vmatpush3.bf16.msra.mxu0 %v3669_v11  ;;  %v1506_v11 = vld [vmem:[%s4952_s6 + $0x78] sm:$0xff] }
 0x21c   : > { %3674 = vmatprep.subr.bf16.mxu0 %v3673_v16  ;;  %v3693_v12 = vpack.c.bf16 %v1506_v11, %v1505_v57 }
 0x21d   : > { %v933_v22 = vpop.f32.mrb[6].mxu1 }
 0x21e   : > { %v935_v25 = vpop.f32.mrb[7].mxu1  ;;  %3244 = vmatmul.mubr.f32.gmra.mrb[34].mxu0 %v933_v22 }
 0x21f   : > { %3676 = vmatpush3.bf16.msra.mxu0 %v3673_v16 }
 0x220   : > { %3678 = vmatprep.subr.bf16.mxu0 %v3677_v21 }
 0x221   : > { %v938_v27 = vpop.f32.mrb[8].mxu1 }
 0x222   : > { %v940_v28 = vpop.f32.mrb[9].mxu1  ;;  %3246 = vmatprep.mubr.f32.mxu0 %v938_v27 }
 0x223   : > { %3680 = vmatpush3.bf16.msra.mxu0 %v3677_v21 }
 0x224   : > { %3682 = vmatprep.subr.bf16.mxu0 %v3681_v26 }
 0x225   : > { %v943_v29 = vpop.f32.mrb[10].mxu1 }
 0x226   : > { %v945_v30 = vpop.f32.mrb[11].mxu1  ;;  %3247 = vmatmul.mubr.f32.gmra.mrb[36].mxu0 %v943_v29  ;;  %v1094_v29 = vlaneseq }
 0x227   : > { %3684 = vmatpush3.bf16.msra.mxu0 %v3681_v26 }
 0x228   : > { %3686 = vmatprep.subr.bf16.mxu0 %v3685_v3  ;;  %v4349_v30 = vshrl.u32 %v1094_v29, 7 }
 0x229   : > { %v948_v31 = vpop.f32.mrb[12].mxu1 }
 0x22a   : > { %v950_v32 = vpop.f32.mrb[13].mxu1  ;;  %3249 = vmatprep.mubr.f32.mxu0 %v948_v31  ;;  %v1096_v31 = vsub.s32 0, %v4349_v30 }
 0x22b   : > { %3688 = vmatpush3.bf16.msra.mxu0 %v3685_v3  ;;  %v1093_v32 = vld [vmem:[%s4951_s5] sm:$0x7] }
 0x22c   : > { %3690 = vmatprep.subr.bf16.mxu0 %v3689_v8 }
 0x22d   : > { %v953_v33 = vpop.f32.mrb[14].mxu1 }
 0x22e   : > { %v955_v34 = vpop.f32.mrb[15].mxu1  ;;  %3250 = vmatmul.mubr.f32.gmra.mrb[38].mxu0 %v953_v33  ;;  %v4357_v33 = vrot.slane %v1093_v32, %v1096_v31 }
 0x22f   : > { %3692 = vmatpush3.bf16.msra.mxu0 %v3689_v8  ;;  %v1421_v34 = vsub.s32 1, %v4349_v30 }
 0x230   : > { %3694 = vmatprep.subr.bf16.mxu0 %v3693_v12 }
 0x231   : > { %v958_v35 = vpop.f32.mrb[16].mxu1 }
 0x232   : > { %v960_v36 = vpop.f32.mrb[17].mxu1  ;;  %3252 = vmatprep.mubr.f32.mxu0 %v958_v35 }
 0x233   : > { %3696 = vmatpush3.bf16.msra.mxu0 %v3693_v12 }
 0x235   : > { %v963_v37 = vpop.f32.mrb[18].mxu1 }
 0x236   : > { %v965_v38 = vpop.f32.mrb[19].mxu1  ;;  %3253 = vmatmul.mubr.f32.gmra.mrb[40].mxu0 %v963_v37  ;;  %v1457_v37 = vsub.s32 2, %v4349_v30 }
 0x239   : > { %v968_v39 = vpop.f32.mrb[20].mxu1 }
 0x23a   : > { %v970_v40 = vpop.f32.mrb[21].mxu1  ;;  %3255 = vmatprep.mubr.f32.mxu0 %v968_v39  ;;  %v4364_v39 = vrot.slane %v1093_v32, %v1421_v34 }
 0x23d   : > { %v973_v41 = vpop.f32.mrb[22].mxu1 }
 0x23e   : > { %v975_v42 = vpop.f32.mrb[23].mxu1  ;;  %3256 = vmatmul.mubr.f32.gmra.mrb[42].mxu0 %v973_v41 }
 0x241   : > { %v978_v43 = vpop.f32.mrb[24].mxu1 }
 0x242   : > { %v980_v44 = vpop.f32.mrb[25].mxu1  ;;  %3258 = vmatprep.mubr.f32.mxu0 %v978_v43 }
 0x243   : > { %v4369_v44 = vrot.slane %v1093_v32, %v1457_v37 }
 0x245   : > { %v983_v45 = vpop.f32.mrb[26].mxu1 }
 0x246   : > { %v985_v46 = vpop.f32.mrb[27].mxu1  ;;  %3259 = vmatmul.mubr.f32.gmra.mrb[44].mxu0 %v983_v45 }
 0x249   : > { %v988_v47 = vpop.f32.mrb[28].mxu1 }
 0x24a   : > { %v990_v48 = vpop.f32.mrb[29].mxu1  ;;  %3261 = vmatprep.mubr.f32.mxu0 %v988_v47 }
 0x24d   : > { %v993_v49 = vpop.f32.mrb[30].mxu1 }
 0x24e   : > { %v995_v50 = vpop.f32.mrb[31].mxu1  ;;  %3262 = vmatmul.mubr.f32.gmra.mrb[46].mxu0 %v993_v49 }
 0x251   : > { %v998_v51 = vpop.f32.mrb[32].mxu1 }
 0x252   : > { %v1000_v52 = vpop.f32.mrb[33].mxu1  ;;  %3264 = vmatprep.mubr.f32.mxu0 %v998_v51 }
 0x255   : > { %v1003_v53 = vpop.f32.mrb[34].mxu1 }
 0x256   : > { %v1005_v54 = vpop.f32.mrb[35].mxu1  ;;  %3265 = vmatmul.mubr.f32.gmra.mrb[48].mxu0 %v1003_v53 }
 0x259   : > { %v1008_v55 = vpop.f32.mrb[36].mxu1 }
 0x25a   : > { %v1010_v58 = vpop.f32.mrb[37].mxu1  ;;  %3267 = vmatprep.mubr.f32.mxu0 %v1008_v55 }
 0x25d   : > { %v1013_v59 = vpop.f32.mrb[38].mxu1 }
 0x25e   : > { %v1015_v60 = vpop.f32.mrb[39].mxu1  ;;  %3268 = vmatmul.mubr.f32.gmra.mrb[50].mxu0 %v1013_v59 }
 0x261   : > { %v1018_v61 = vpop.f32.mrb[40].mxu1 }
 0x262   : > { %v1020_v62 = vpop.f32.mrb[41].mxu1  ;;  %3270 = vmatprep.mubr.f32.mxu0 %v1018_v61 }
 0x265   : > { %v1023_v63 = vpop.f32.mrb[42].mxu1 }
 0x266   : > { %v1025_v0 = vpop.f32.mrb[43].mxu1  ;;  %3271 = vmatmul.mubr.f32.gmra.mrb[52].mxu0 %v1023_v63 }
 0x269   : > { %v1028_v4 = vpop.f32.mrb[44].mxu1 }
 0x26a   : > { %v1030_v5 = vpop.f32.mrb[45].mxu1  ;;  %3273 = vmatprep.mubr.f32.mxu0 %v1028_v4 }
 0x26d   : > { %v1033_v9 = vpop.f32.mrb[46].mxu1 }
 0x26e   : > { %v1035_v10 = vpop.f32.mrb[47].mxu1  ;;  %3274 = vmatmul.mubr.f32.gmra.mrb[54].mxu0 %v1033_v9 }
 0x271   : > { %v1038_v13 = vpop.f32.mrb[48].mxu1 }
 0x272   : > { %v1040_v14 = vpop.f32.mrb[49].mxu1  ;;  %3276 = vmatprep.mubr.f32.mxu0 %v1038_v13 }
 0x275   : > { %v1043_v15 = vpop.f32.mrb[50].mxu1 }
 0x276   : > { %v1045_v16 = vpop.f32.mrb[51].mxu1  ;;  %3277 = vmatmul.mubr.f32.gmra.mrb[56].mxu0 %v1043_v15 }
 0x279   : > { %v1048_v17 = vpop.f32.mrb[52].mxu1 }
 0x27a   : > { %v1050_v18 = vpop.f32.mrb[53].mxu1  ;;  %3279 = vmatprep.mubr.f32.mxu0 %v1048_v17 }
 0x27d   : > { %v1053_v19 = vpop.f32.mrb[54].mxu1 }
 0x27e   : > { %v1055_v20 = vpop.f32.mrb[55].mxu1  ;;  %3280 = vmatmul.mubr.f32.gmra.mrb[58].mxu0 %v1053_v19 }
 0x281   : > { %v1058_v21 = vpop.f32.mrb[56].mxu1 }
 0x282   : > { %v1060_v22 = vpop.f32.mrb[57].mxu1  ;;  %3282 = vmatprep.mubr.f32.mxu0 %v1058_v21 }
 0x285   : > { %v1063_v23 = vpop.f32.mrb[58].mxu1 }
 0x286   : > { %v1065_v24 = vpop.f32.mrb[59].mxu1  ;;  %3283 = vmatmul.mubr.f32.gmra.mrb[60].mxu0 %v1063_v23 }
 0x289   : > { %v1068_v25 = vpop.f32.mrb[60].mxu1 }
 0x28a   : > { %v1070_v26 = vpop.f32.mrb[61].mxu1  ;;  %3285 = vmatprep.mubr.f32.mxu0 %v1068_v25 }
 0x28d   : > { %v1073_v27 = vpop.f32.mrb[62].mxu1 }
 0x28e   : > { %v1075_v28 = vpop.f32.mrb[63].mxu1  ;;  %3286 = vmatmul.mubr.f32.gmra.mrb[62].mxu0 %v1073_v27 }
 0x2e9   : > { %v3242_v35 = vpop.f32.mrb[32].mxu0 }
 0x2ea   : > { %v1170_v36 = vadd.f32 %v3242_v35, %v4357_v33  ;;  %v1164_v38 = vpop.f32.mrb[33].mxu0 }
 0x2eb   : > { %v1165_v40 = vadd.f32 %v1164_v38, %v4357_v33 }
 0x2ec   : > { %vm1324_vm0 = vcmp.gt.f32.partialorder %v1170_v36, 0.0  ;;  %v1356_v41 = vmul.f32 0.2, %v1170_v36 }
 0x2ed   : > { %vm1323_vm1 = vcmp.gt.f32.partialorder %v1165_v40, 0.0  ;;  %v1355_v42 = vmul.f32 0.2, %v1165_v40 }
 0x2ee   : > { %v1388_v43 = vsel %vm1324_vm0, %v1170_v36, %v1356_v41 }
 0x2ef   : > { %v1424_v45 = vmul.f32 %v4364_v39, %v1388_v43  ;;  %v1387_v46 = vsel %vm1323_vm1, %v1165_v40, %v1355_v42 }
 0x2f0   : > { %v1423_v47 = vmul.f32 %v4364_v39, %v1387_v46 }
 0x2f1   : > { %v3245_v48 = vpop.f32.mrb[34].mxu0  ;;  %v1460_v52 = vadd.f32 %v4369_v44, %v1424_v45 }
 0x2f2   : > { %v1180_v49 = vadd.f32 %v3245_v48, %v4357_v33  ;;  %v1174_v50 = vpop.f32.mrb[35].mxu0  ;;  %v1459_v51 = vadd.f32 %v4369_v44, %v1423_v47 }
 0x2f3   : > { %v1175_v53 = vadd.f32 %v1174_v50, %v4357_v33 }
 0x2f4   : > { %vm1326_vm2 = vcmp.gt.f32.partialorder %v1180_v49, 0.0  ;;  %v1358_v54 = vmul.f32 0.2, %v1180_v49  ;;  %3320 = vmatprep.mubr.f32.mxu0 %v1459_v51 }
 0x2f5   : > { %vm1325_vm3 = vcmp.gt.f32.partialorder %v1175_v53, 0.0  ;;  %v1357_v55 = vmul.f32 0.2, %v1175_v53  ;;  %3321 = vmatmul.mubr.f32.vlgmr.msra.gmra.mrb[64].mxu0 %v1460_v52 }
 0x2f6   : > { %v1390_v58 = vsel %vm1326_vm2, %v1180_v49, %v1358_v54 }
 0x2f7   : > { %v1389_v59 = vsel %vm1325_vm3, %v1175_v53, %v1357_v55  ;;  %v1426_v60 = vmul.f32 %v4364_v39, %v1390_v58 }
 0x2f8   : > { %v1425_v61 = vmul.f32 %v4364_v39, %v1389_v59 }
 0x2f9   : > { %v3248_v62 = vpop.f32.mrb[36].mxu0  ;;  %v1462_v3 = vadd.f32 %v4369_v44, %v1426_v60 }
 0x2fa   : > { %v1190_v63 = vadd.f32 %v3248_v62, %v4357_v33  ;;  %v1184_v0 = vpop.f32.mrb[37].mxu0  ;;  %v1461_v1 = vadd.f32 %v4369_v44, %v1425_v61 }
 0x2fb   : > { %v1185_v2 = vadd.f32 %v1184_v0, %v4357_v33 }
 0x2fc   : > { %vm1328_vm4 = vcmp.gt.f32.partialorder %v1190_v63, 0.0  ;;  %v1360_v4 = vmul.f32 0.2, %v1190_v63  ;;  %3323 = vmatprep.mubr.f32.mxu0 %v1461_v1 }
 0x2fd   : > { %vm1327_vm5 = vcmp.gt.f32.partialorder %v1185_v2, 0.0  ;;  %v1359_v5 = vmul.f32 0.2, %v1185_v2  ;;  %3324 = vmatmul.mubr.f32.gmra.mrb[66].mxu0 %v1462_v3 }
 0x2fe   : > { %v1392_v6 = vsel %vm1328_vm4, %v1190_v63, %v1360_v4 }
 0x2ff   : > { %v1391_v7 = vsel %vm1327_vm5, %v1185_v2, %v1359_v5  ;;  %v1428_v8 = vmul.f32 %v4364_v39, %v1392_v6 }
 0x300   : > { %v1427_v9 = vmul.f32 %v4364_v39, %v1391_v7 }
 0x301   : > { %v3251_v10 = vpop.f32.mrb[38].mxu0  ;;  %v1464_v14 = vadd.f32 %v4369_v44, %v1428_v8 }
 0x302   : > { %v1200_v57 = vadd.f32 %v3251_v10, %v4357_v33  ;;  %v1194_v11 = vpop.f32.mrb[39].mxu0  ;;  %v1463_v12 = vadd.f32 %v4369_v44, %v1427_v9 }
 0x303   : > { %v1195_v13 = vadd.f32 %v1194_v11, %v4357_v33 }
 0x304   : > { %vm1330_vm6 = vcmp.gt.f32.partialorder %v1200_v57, 0.0  ;;  %v1362_v15 = vmul.f32 0.2, %v1200_v57  ;;  %3326 = vmatprep.mubr.f32.mxu0 %v1463_v12 }
 0x305   : > { %vm1329_vm7 = vcmp.gt.f32.partialorder %v1195_v13, 0.0  ;;  %v1361_v16 = vmul.f32 0.2, %v1195_v13  ;;  %3327 = vmatmul.mubr.f32.gmra.mrb[68].mxu0 %v1464_v14 }
 0x306   : > { %v1394_v17 = vsel %vm1330_vm6, %v1200_v57, %v1362_v15 }
 0x307   : > { %v1393_v18 = vsel %vm1329_vm7, %v1195_v13, %v1361_v16  ;;  %v1430_v19 = vmul.f32 %v4364_v39, %v1394_v17 }
 0x308   : > { %v1429_v20 = vmul.f32 %v4364_v39, %v1393_v18 }
 0x309   : > { %v3254_v21 = vpop.f32.mrb[40].mxu0  ;;  %v1466_v26 = vadd.f32 %v4369_v44, %v1430_v19 }
 0x30a   : > { %v1210_v22 = vadd.f32 %v3254_v21, %v4357_v33  ;;  %v1204_v23 = vpop.f32.mrb[41].mxu0  ;;  %v1465_v24 = vadd.f32 %v4369_v44, %v1429_v20 }
 0x30b   : > { %v1205_v25 = vadd.f32 %v1204_v23, %v4357_v33 }
 0x30c   : > { %vm1332_vm8 = vcmp.gt.f32.partialorder %v1210_v22, 0.0  ;;  %v1364_v27 = vmul.f32 0.2, %v1210_v22  ;;  %3329 = vmatprep.mubr.f32.mxu0 %v1465_v24 }
 0x30d   : > { %vm1331_vm9 = vcmp.gt.f32.partialorder %v1205_v25, 0.0  ;;  %v1363_v28 = vmul.f32 0.2, %v1205_v25  ;;  %3330 = vmatmul.mubr.f32.gmra.mrb[70].mxu0 %v1466_v26 }
 0x30e   : > { %v1396_v29 = vsel %vm1332_vm8, %v1210_v22, %v1364_v27 }
 0x30f   : > { %v1395_v32 = vsel %vm1331_vm9, %v1205_v25, %v1363_v28  ;;  %v1432_v35 = vmul.f32 %v4364_v39, %v1396_v29 }
 0x310   : > { %v1431_v36 = vmul.f32 %v4364_v39, %v1395_v32 }
 0x311   : > { %v3257_v38 = vpop.f32.mrb[42].mxu0  ;;  %v1468_v45 = vadd.f32 %v4369_v44, %v1432_v35 }
 0x312   : > { %v1220_v40 = vadd.f32 %v3257_v38, %v4357_v33  ;;  %v1214_v41 = vpop.f32.mrb[43].mxu0  ;;  %v1467_v42 = vadd.f32 %v4369_v44, %v1431_v36 }
 0x313   : > { %v1215_v43 = vadd.f32 %v1214_v41, %v4357_v33 }
 0x314   : > { %vm1334_vm10 = vcmp.gt.f32.partialorder %v1220_v40, 0.0  ;;  %v1366_v46 = vmul.f32 0.2, %v1220_v40  ;;  %3332 = vmatprep.mubr.f32.mxu0 %v1467_v42 }
 0x315   : > { %vm1333_vm11 = vcmp.gt.f32.partialorder %v1215_v43, 0.0  ;;  %v1365_v47 = vmul.f32 0.2, %v1215_v43  ;;  %3333 = vmatmul.mubr.f32.gmra.mrb[72].mxu0 %v1468_v45 }
 0x316   : > { %v1398_v48 = vsel %vm1334_vm10, %v1220_v40, %v1366_v46 }
 0x317   : > { %v1397_v49 = vsel %vm1333_vm11, %v1215_v43, %v1365_v47  ;;  %v1434_v50 = vmul.f32 %v4364_v39, %v1398_v48 }
 0x318   : > { %v1433_v51 = vmul.f32 %v4364_v39, %v1397_v49 }
 0x319   : > { %v3260_v52 = vpop.f32.mrb[44].mxu0  ;;  %v1470_v59 = vadd.f32 %v4369_v44, %v1434_v50 }
 0x31a   : > { %v1230_v53 = vadd.f32 %v3260_v52, %v4357_v33  ;;  %v1224_v54 = vpop.f32.mrb[45].mxu0  ;;  %v1469_v55 = vadd.f32 %v4369_v44, %v1433_v51 }
 0x31b   : > { %v1225_v58 = vadd.f32 %v1224_v54, %v4357_v33 }
 0x31c   : > { %vm1336_vm12 = vcmp.gt.f32.partialorder %v1230_v53, 0.0  ;;  %v1368_v60 = vmul.f32 0.2, %v1230_v53  ;;  %3335 = vmatprep.mubr.f32.mxu0 %v1469_v55 }
 0x31d   : > { %vm1335_vm13 = vcmp.gt.f32.partialorder %v1225_v58, 0.0  ;;  %v1367_v61 = vmul.f32 0.2, %v1225_v58  ;;  %3336 = vmatmul.mubr.f32.gmra.mrb[74].mxu0 %v1470_v59 }
 0x31e   : > { %v1400_v62 = vsel %vm1336_vm12, %v1230_v53, %v1368_v60 }
 0x31f   : > { %v1399_v63 = vsel %vm1335_vm13, %v1225_v58, %v1367_v61  ;;  %v1436_v0 = vmul.f32 %v4364_v39, %v1400_v62 }
 0x320   : > { %v1435_v1 = vmul.f32 %v4364_v39, %v1399_v63 }
 0x321   : > { %v3263_v2 = vpop.f32.mrb[46].mxu0  ;;  %v1472_v7 = vadd.f32 %v4369_v44, %v1436_v0 }
 0x322   : > { %v1240_v3 = vadd.f32 %v3263_v2, %v4357_v33  ;;  %v1234_v4 = vpop.f32.mrb[47].mxu0  ;;  %v1471_v5 = vadd.f32 %v4369_v44, %v1435_v1 }
 0x323   : > { %v1235_v6 = vadd.f32 %v1234_v4, %v4357_v33 }
 0x324   : > { %vm1338_vm14 = vcmp.gt.f32.partialorder %v1240_v3, 0.0  ;;  %v1370_v8 = vmul.f32 0.2, %v1240_v3  ;;  %3338 = vmatprep.mubr.f32.mxu0 %v1471_v5 }
 0x325   : > { %vm1337_vm15 = vcmp.gt.f32.partialorder %v1235_v6, 0.0  ;;  %v1369_v9 = vmul.f32 0.2, %v1235_v6  ;;  %3339 = vmatmul.mubr.f32.gmra.mrb[76].mxu0 %v1472_v7 }
 0x326   : > { %v1402_v10 = vsel %vm1338_vm14, %v1240_v3, %v1370_v8 }
 0x327   : > { %v1401_v57 = vsel %vm1337_vm15, %v1235_v6, %v1369_v9  ;;  %v1438_v11 = vmul.f32 %v4364_v39, %v1402_v10 }
 0x328   : > { %v1437_v12 = vmul.f32 %v4364_v39, %v1401_v57 }
 0x329   : > { %v3266_v13 = vpop.f32.mrb[48].mxu0  ;;  %v1474_v18 = vadd.f32 %v4369_v44, %v1438_v11 }
 0x32a   : > { %v1250_v14 = vadd.f32 %v3266_v13, %v4357_v33  ;;  %v1244_v15 = vpop.f32.mrb[49].mxu0  ;;  %v1473_v16 = vadd.f32 %v4369_v44, %v1437_v12 }
 0x32b   : > { %v1245_v17 = vadd.f32 %v1244_v15, %v4357_v33 }
 0x32c   : > { %vm1340_vm0 = vcmp.gt.f32.partialorder %v1250_v14, 0.0  ;;  %v1372_v19 = vmul.f32 0.2, %v1250_v14  ;;  %3341 = vmatprep.mubr.f32.mxu0 %v1473_v16 }
 0x32d   : > { %vm1339_vm1 = vcmp.gt.f32.partialorder %v1245_v17, 0.0  ;;  %v1371_v20 = vmul.f32 0.2, %v1245_v17  ;;  %3342 = vmatmul.mubr.f32.gmra.mrb[78].mxu0 %v1474_v18 }
 0x32e   : > { %v1404_v21 = vsel %vm1340_vm0, %v1250_v14, %v1372_v19 }
 0x32f   : > { %v1403_v22 = vsel %vm1339_vm1, %v1245_v17, %v1371_v20  ;;  %v1440_v23 = vmul.f32 %v4364_v39, %v1404_v21 }
 0x330   : > { %v1439_v24 = vmul.f32 %v4364_v39, %v1403_v22 }
 0x331   : > { %v3269_v25 = vpop.f32.mrb[50].mxu0  ;;  %v1476_v32 = vadd.f32 %v4369_v44, %v1440_v23 }
 0x332   : > { %v1260_v26 = vadd.f32 %v3269_v25, %v4357_v33  ;;  %v1254_v27 = vpop.f32.mrb[51].mxu0  ;;  %v1475_v28 = vadd.f32 %v4369_v44, %v1439_v24 }
 0x333   : > { %v1255_v29 = vadd.f32 %v1254_v27, %v4357_v33 }
 0x334   : > { %vm1342_vm2 = vcmp.gt.f32.partialorder %v1260_v26, 0.0  ;;  %v1374_v35 = vmul.f32 0.2, %v1260_v26  ;;  %3344 = vmatprep.mubr.f32.mxu0 %v1475_v28 }
 0x335   : > { %vm1341_vm3 = vcmp.gt.f32.partialorder %v1255_v29, 0.0  ;;  %v1373_v36 = vmul.f32 0.2, %v1255_v29  ;;  %3345 = vmatmul.mubr.f32.gmra.mrb[80].mxu0 %v1476_v32 }
 0x336   : > { %v1406_v38 = vsel %vm1342_vm2, %v1260_v26, %v1374_v35 }
 0x337   : > { %v1405_v40 = vsel %vm1341_vm3, %v1255_v29, %v1373_v36  ;;  %v1442_v41 = vmul.f32 %v4364_v39, %v1406_v38 }
 0x338   : > { %v1441_v42 = vmul.f32 %v4364_v39, %v1405_v40 }
 0x339   : > { %v3272_v43 = vpop.f32.mrb[52].mxu0  ;;  %v1478_v49 = vadd.f32 %v4369_v44, %v1442_v41 }
 0x33a   : > { %v1270_v45 = vadd.f32 %v3272_v43, %v4357_v33  ;;  %v1264_v46 = vpop.f32.mrb[53].mxu0  ;;  %v1477_v47 = vadd.f32 %v4369_v44, %v1441_v42 }
 0x33b   : > { %v1265_v48 = vadd.f32 %v1264_v46, %v4357_v33 }
 0x33c   : > { %vm1344_vm4 = vcmp.gt.f32.partialorder %v1270_v45, 0.0  ;;  %v1376_v50 = vmul.f32 0.2, %v1270_v45  ;;  %3347 = vmatprep.mubr.f32.mxu0 %v1477_v47 }
 0x33d   : > { %vm1343_vm5 = vcmp.gt.f32.partialorder %v1265_v48, 0.0  ;;  %v1375_v51 = vmul.f32 0.2, %v1265_v48  ;;  %3348 = vmatmul.mubr.f32.gmra.mrb[82].mxu0 %v1478_v49 }
 0x33e   : > { %v1408_v52 = vsel %vm1344_vm4, %v1270_v45, %v1376_v50 }
 0x33f   : > { %v1407_v53 = vsel %vm1343_vm5, %v1265_v48, %v1375_v51  ;;  %v1444_v54 = vmul.f32 %v4364_v39, %v1408_v52 }
 0x340   : > { %v1443_v55 = vmul.f32 %v4364_v39, %v1407_v53 }
 0x341   : > { %v3275_v58 = vpop.f32.mrb[54].mxu0  ;;  %v1480_v63 = vadd.f32 %v4369_v44, %v1444_v54 }
 0x342   : > { %v1280_v59 = vadd.f32 %v3275_v58, %v4357_v33  ;;  %v1274_v60 = vpop.f32.mrb[55].mxu0  ;;  %v1479_v61 = vadd.f32 %v4369_v44, %v1443_v55 }
 0x343   : > { %v1275_v62 = vadd.f32 %v1274_v60, %v4357_v33 }
 0x344   : > { %vm1346_vm6 = vcmp.gt.f32.partialorder %v1280_v59, 0.0  ;;  %v1378_v0 = vmul.f32 0.2, %v1280_v59  ;;  %3350 = vmatprep.mubr.f32.mxu0 %v1479_v61 }
 0x345   : > { %vm1345_vm7 = vcmp.gt.f32.partialorder %v1275_v62, 0.0  ;;  %v1377_v1 = vmul.f32 0.2, %v1275_v62  ;;  %3351 = vmatmul.mubr.f32.gmra.mrb[84].mxu0 %v1480_v63 }
 0x346   : > { %v1410_v2 = vsel %vm1346_vm6, %v1280_v59, %v1378_v0 }
 0x347   : > { %v1409_v3 = vsel %vm1345_vm7, %v1275_v62, %v1377_v1  ;;  %v1446_v4 = vmul.f32 %v4364_v39, %v1410_v2 }
 0x348   : > { %v1445_v5 = vmul.f32 %v4364_v39, %v1409_v3 }
 0x349   : > { %v3278_v6 = vpop.f32.mrb[56].mxu0  ;;  %v1482_v57 = vadd.f32 %v4369_v44, %v1446_v4 }
 0x34a   : > { %v1290_v7 = vadd.f32 %v3278_v6, %v4357_v33  ;;  %v1284_v8 = vpop.f32.mrb[57].mxu0  ;;  %v1481_v9 = vadd.f32 %v4369_v44, %v1445_v5 }
 0x34b   : > { %v1285_v10 = vadd.f32 %v1284_v8, %v4357_v33 }
 0x34c   : > { %vm1348_vm8 = vcmp.gt.f32.partialorder %v1290_v7, 0.0  ;;  %v1380_v11 = vmul.f32 0.2, %v1290_v7  ;;  %3353 = vmatprep.mubr.f32.mxu0 %v1481_v9 }
 0x34d   : > { %vm1347_vm9 = vcmp.gt.f32.partialorder %v1285_v10, 0.0  ;;  %v1379_v12 = vmul.f32 0.2, %v1285_v10  ;;  %3354 = vmatmul.mubr.f32.gmra.mrb[86].mxu0 %v1482_v57 }
 0x34e   : > { %v1412_v13 = vsel %vm1348_vm8, %v1290_v7, %v1380_v11 }
 0x34f   : > { %v1411_v14 = vsel %vm1347_vm9, %v1285_v10, %v1379_v12  ;;  %v1448_v15 = vmul.f32 %v4364_v39, %v1412_v13 }
 0x350   : > { %v1447_v16 = vmul.f32 %v4364_v39, %v1411_v14 }
 0x351   : > { %v3281_v17 = vpop.f32.mrb[58].mxu0  ;;  %v1484_v22 = vadd.f32 %v4369_v44, %v1448_v15 }
 0x352   : > { %v1300_v18 = vadd.f32 %v3281_v17, %v4357_v33  ;;  %v1294_v19 = vpop.f32.mrb[59].mxu0  ;;  %v1483_v20 = vadd.f32 %v4369_v44, %v1447_v16 }
 0x353   : > { %v1295_v21 = vadd.f32 %v1294_v19, %v4357_v33 }
 0x354   : > { %vm1350_vm10 = vcmp.gt.f32.partialorder %v1300_v18, 0.0  ;;  %v1382_v23 = vmul.f32 0.2, %v1300_v18  ;;  %3356 = vmatprep.mubr.f32.mxu0 %v1483_v20 }
 0x355   : > { %vm1349_vm11 = vcmp.gt.f32.partialorder %v1295_v21, 0.0  ;;  %v1381_v24 = vmul.f32 0.2, %v1295_v21  ;;  %3357 = vmatmul.mubr.f32.gmra.mrb[88].mxu0 %v1484_v22 }
 0x356   : > { %v1414_v25 = vsel %vm1350_vm10, %v1300_v18, %v1382_v23 }
 0x357   : > { %v1413_v26 = vsel %vm1349_vm11, %v1295_v21, %v1381_v24  ;;  %v1450_v27 = vmul.f32 %v4364_v39, %v1414_v25 }
 0x358   : > { %v1449_v28 = vmul.f32 %v4364_v39, %v1413_v26 }
 0x359   : > { %v3284_v29 = vpop.f32.mrb[60].mxu0  ;;  %v1486_v40 = vadd.f32 %v4369_v44, %v1450_v27 }
 0x35a   : > { %v1310_v32 = vadd.f32 %v3284_v29, %v4357_v33  ;;  %v1304_v35 = vpop.f32.mrb[61].mxu0  ;;  %v1485_v36 = vadd.f32 %v4369_v44, %v1449_v28 }
 0x35b   : > { %v1305_v38 = vadd.f32 %v1304_v35, %v4357_v33 }
 0x35c   : > { %vm1352_vm12 = vcmp.gt.f32.partialorder %v1310_v32, 0.0  ;;  %v1384_v41 = vmul.f32 0.2, %v1310_v32  ;;  %3359 = vmatprep.mubr.f32.mxu0 %v1485_v36 }
 0x35d   : > { %vm1351_vm13 = vcmp.gt.f32.partialorder %v1305_v38, 0.0  ;;  %v1383_v42 = vmul.f32 0.2, %v1305_v38  ;;  %3360 = vmatmul.mubr.f32.gmra.mrb[90].mxu0 %v1486_v40 }
 0x35e   : > { %v1416_v43 = vsel %vm1352_vm12, %v1310_v32, %v1384_v41 }
 0x35f   : > { %v1415_v45 = vsel %vm1351_vm13, %v1305_v38, %v1383_v42  ;;  %v1452_v46 = vmul.f32 %v4364_v39, %v1416_v43 }
 0x360   : > { %v1451_v47 = vmul.f32 %v4364_v39, %v1415_v45 }
 0x361   : > { %v3287_v48 = vpop.f32.mrb[62].mxu0  ;;  %v1488_v53 = vadd.f32 %v4369_v44, %v1452_v46 }
 0x362   : > { %v1320_v49 = vadd.f32 %v3287_v48, %v4357_v33  ;;  %v1314_v50 = vpop.f32.mrb[63].mxu0  ;;  %v1487_v51 = vadd.f32 %v4369_v44, %v1451_v47 }
 0x363   : > { %v1315_v52 = vadd.f32 %v1314_v50, %v4357_v33 }
 0x364   : > { %vm1354_vm14 = vcmp.gt.f32.partialorder %v1320_v49, 0.0  ;;  %v1386_v54 = vmul.f32 0.2, %v1320_v49  ;;  %3362 = vmatprep.mubr.f32.mxu0 %v1487_v51  ;;  %v1957_v51 = vld [vmem:[%s4953_s7] sm:$0xff] }
 0x365   : > { %vm1353_vm15 = vcmp.gt.f32.partialorder %v1315_v52, 0.0  ;;  %v1385_v55 = vmul.f32 0.2, %v1315_v52  ;;  %3363 = vmatmul.mubr.f32.gmra.mrb[92].mxu0 %v1488_v53  ;;  %v1959_v53 = vld [vmem:[%s4953_s7 + $0x10] sm:$0xff] }
 0x366   : > { %v1418_v58 = vsel %vm1354_vm14, %v1320_v49, %v1386_v54 }
 0x367   : > { %v1417_v59 = vsel %vm1353_vm15, %v1315_v52, %v1385_v55  ;;  %v1454_v60 = vmul.f32 %v4364_v39, %v1418_v58  ;;  %v1958_v52 = vld [vmem:[%s4953_s7 + $0x8] sm:$0xff]  ;;  %v1961_v58 = vld [vmem:[%s4953_s7 + $0x20] sm:$0xff] }
 0x368   : > { %v1453_v61 = vmul.f32 %v4364_v39, %v1417_v59  ;;  %v3745_v54 = vpack.c.bf16 %v1958_v52, %v1957_v51  ;;  %v1962_v59 = vld [vmem:[%s4953_s7 + $0x28] sm:$0xff]  ;;  %v3954_v52 = vld [vmem:[%s4167_s21 + $0x140] sm:$0xff] }
 0x369   : > { %v1490_v63 = vadd.f32 %v4369_v44, %v1454_v60  ;;  %v3914_v60 = vld [vmem:[%s4167_s21] sm:$0xff]  ;;  %v3953_v51 = vld [vmem:[%s4167_s21 + $0x148] sm:$0xff] }
 0x36a   : > { %v1489_v62 = vadd.f32 %v4369_v44, %v1453_v61  ;;  %3746 = vmatprep.subr.bf16.mxu0 %v3745_v54  ;;  %v3915_v61 = vld [vmem:[%s4167_s21 + $0x18] sm:$0xff] }
 0x36b   : > { %3748 = vmatpush3.bf16.msra.mxu0 %v3745_v54  ;;  %v1971_v54 = vld [vmem:[%s4953_s7 + $0x70] sm:$0xff] }
 0x36c   : > { %3365 = vmatprep.mubr.f32.mxu0 %v1489_v62  ;;  %v3753_v62 = vpack.c.bf16 %v1962_v59, %v1961_v58  ;;  %v3956_v58 = vld [vmem:[%s4167_s21 + $0x150] sm:$0xff]  ;;  %v3957_v59 = vld [vmem:[%s4167_s21 + $0x168] sm:$0xff] }
 0x36d   : > { %3366 = vmatmul.mubr.f32.gmra.mrb[94].mxu0 %v1490_v63  ;;  %v1963_v63 = vld [vmem:[%s4953_s7 + $0x30] sm:$0xff] }
 0x3c8   : > { %v3322_v33 = vpop.f32.mrb[64].mxu0 }
 0x3c9   : > { %v1573_v0 = vpop.f32.mrb[65].mxu0 }
 0x3ca   : > { %v3698_v1 = vpack.c.bf16 %v3322_v33, %v1573_v0  ;;  %v1964_v33 = vld [vmem:[%s4953_s7 + $0x38] sm:$0xff]  ;;  %v3916_v0 = vld [vmem:[%s4167_s21 + $0x10] sm:$0xff] }
 0x3cc   : > { %3699 = vmatpush1.bf16.msra.mxu1 %v3698_v1  ;;  %v3917_v1 = vld [vmem:[%s4167_s21 + $0x28] sm:$0xff] }
 0x3cd   : > { %3700 = vmatprep.subr.bf16.mxu1 %v3985_v56 }
 0x3d0   : > { %v3325_v2 = vpop.f32.mrb[66].mxu0 }
 0x3d1   : > { %v1583_v3 = vpop.f32.mrb[67].mxu0 }
 0x3d2   : > { %v3701_v4 = vpack.c.bf16 %v3325_v2, %v1583_v3  ;;  %v3757_v2 = vpack.c.bf16 %v1964_v33, %v1963_v63  ;;  %v1965_v3 = vld [vmem:[%s4953_s7 + $0x40] sm:$0xff]  ;;  %v3961_v63 = vld [vmem:[%s4167_s21 + $0x188] sm:$0xff] }
 0x3d3   : > { %v3962_v33 = vld [vmem:[%s4167_s21 + $0x180] sm:$0xff] }
 0x3d4   : > { %3702 = vmatpush1.bf16.msra.mxu1 %v3701_v4  ;;  %v1966_v4 = vld [vmem:[%s4953_s7 + $0x48] sm:$0xff] }
 0x3d5   : > { %3703 = vmatprep.subr.bf16.mxu1 %v3985_v56 }
 0x3d8   : > { %v3328_v5 = vpop.f32.mrb[68].mxu0 }
 0x3d9   : > { %v1593_v39 = vpop.f32.mrb[69].mxu0 }
 0x3da   : > { %v3704_v6 = vpack.c.bf16 %v3328_v5, %v1593_v39  ;;  %v3918_v5 = vld [vmem:[%s4167_s21 + $0x20] sm:$0xff]  ;;  %v3919_v39 = vld [vmem:[%s4167_s21 + $0x38] sm:$0xff] }
 0x3dc   : > { %3705 = vmatpush1.bf16.msra.mxu1 %v3704_v6  ;;  %v3761_v6 = vpack.c.bf16 %v1966_v4, %v1965_v3  ;;  %v3966_v3 = vld [vmem:[%s4167_s21 + $0x1a0] sm:$0xff]  ;;  %v3967_v4 = vld [vmem:[%s4167_s21 + $0x1b8] sm:$0xff] }
 0x3dd   : > { %3706 = vmatprep.subr.bf16.mxu1 %v3985_v56 }
 0x3e0   : > { %v3331_v44 = vpop.f32.mrb[70].mxu0 }
 0x3e1   : > { %v1603_v7 = vpop.f32.mrb[71].mxu0 }
 0x3e2   : > { %v3707_v8 = vpack.c.bf16 %v3331_v44, %v1603_v7  ;;  %v1967_v44 = vld [vmem:[%s4953_s7 + $0x50] sm:$0xff]  ;;  %v1968_v7 = vld [vmem:[%s4953_s7 + $0x58] sm:$0xff] }
 0x3e4   : > { %3708 = vmatpush1.bf16.msra.mxu1 %v3707_v8  ;;  %v3920_v8 = vld [vmem:[%s4167_s21 + $0x30] sm:$0xff] }
 0x3e5   : > { %3709 = vmatprep.subr.bf16.mxu1 %v3985_v56 }
 0x3e8   : > { %v3334_v9 = vpop.f32.mrb[72].mxu0 }
 0x3e9   : > { %v1613_v10 = vpop.f32.mrb[73].mxu0 }
 0x3ea   : > { %v3710_v57 = vpack.c.bf16 %v3334_v9, %v1613_v10  ;;  %v3921_v9 = vld [vmem:[%s4167_s21 + $0x48] sm:$0xff]  ;;  %v3765_v10 = vpack.c.bf16 %v1968_v7, %v1967_v44  ;;  %v3971_v44 = vld [vmem:[%s4167_s21 + $0x1d8] sm:$0xff]  ;;  %v3972_v7 = vld [vmem:[%s4167_s21 + $0x1d0] sm:$0xff] }
 0x3ec   : > { %3711 = vmatpush1.bf16.msra.mxu1 %v3710_v57  ;;  %v1969_v57 = vld [vmem:[%s4953_s7 + $0x60] sm:$0xff] }
 0x3ed   : > { %3712 = vmatprep.subr.bf16.mxu1 %v3985_v56 }
 0x3f0   : > { %v3337_v11 = vpop.f32.mrb[74].mxu0 }
 0x3f1   : > { %v1623_v12 = vpop.f32.mrb[75].mxu0 }
 0x3f2   : > { %v3713_v13 = vpack.c.bf16 %v3337_v11, %v1623_v12  ;;  %v1970_v11 = vld [vmem:[%s4953_s7 + $0x68] sm:$0xff]  ;;  %v3922_v12 = vld [vmem:[%s4167_s21 + $0x40] sm:$0xff] }
 0x3f4   : > { %3714 = vmatpush1.bf16.msra.mxu1 %v3713_v13  ;;  %v3923_v13 = vld [vmem:[%s4167_s21 + $0x58] sm:$0xff] }
 0x3f5   : > { %3715 = vmatprep.subr.bf16.mxu1 %v3985_v56 }
 0x3f8   : > { %v3340_v14 = vpop.f32.mrb[76].mxu0 }
 0x3f9   : > { %v1633_v15 = vpop.f32.mrb[77].mxu0 }
 0x3fa   : > { %v3716_v16 = vpack.c.bf16 %v3340_v14, %v1633_v15  ;;  %v3769_v14 = vpack.c.bf16 %v1970_v11, %v1969_v57  ;;  %v3924_v15 = vld [vmem:[%s4167_s21 + $0x50] sm:$0xff] }
 0x3fb   : > { %v3976_v57 = vld [vmem:[%s4167_s21 + $0x1f0] sm:$0xff] }
 0x3fc   : > { %3717 = vmatpush1.bf16.msra.mxu1 %v3716_v16  ;;  %v3925_v16 = vld [vmem:[%s4167_s21 + $0x68] sm:$0xff] }
 0x3fd   : > { %3718 = vmatprep.subr.bf16.mxu1 %v3985_v56 }
 0x400   : > { %v3343_v17 = vpop.f32.mrb[78].mxu0 }
 0x401   : > { %v1643_v18 = vpop.f32.mrb[79].mxu0 }
 0x402   : > { %v3719_v19 = vpack.c.bf16 %v3343_v17, %v1643_v18  ;;  %v3926_v17 = vld [vmem:[%s4167_s21 + $0x60] sm:$0xff]  ;;  %v3927_v18 = vld [vmem:[%s4167_s21 + $0x78] sm:$0xff] }
 0x404   : > { %3720 = vmatpush1.bf16.msra.mxu1 %v3719_v19  ;;  %v3928_v19 = vld [vmem:[%s4167_s21 + $0x70] sm:$0xff] }
 0x405   : > { %3721 = vmatprep.subr.bf16.mxu1 %v3985_v56 }
 0x408   : > { %v3346_v20 = vpop.f32.mrb[80].mxu0 }
 0x409   : > { %v1653_v21 = vpop.f32.mrb[81].mxu0 }
 0x40a   : > { %v3722_v22 = vpack.c.bf16 %v3346_v20, %v1653_v21  ;;  %v3929_v20 = vld [vmem:[%s4167_s21 + $0x88] sm:$0xff]  ;;  %v3930_v21 = vld [vmem:[%s4167_s21 + $0x80] sm:$0xff] }
 0x40c   : > { %3723 = vmatpush1.bf16.msra.mxu1 %v3722_v22  ;;  %v3931_v22 = vld [vmem:[%s4167_s21 + $0x98] sm:$0xff] }
 0x40d   : > { %3724 = vmatprep.subr.bf16.mxu1 %v3985_v56 }
 0x410   : > { %v3349_v23 = vpop.f32.mrb[82].mxu0 }
 0x411   : > { %v1663_v24 = vpop.f32.mrb[83].mxu0 }
 0x412   : > { %v3725_v25 = vpack.c.bf16 %v3349_v23, %v1663_v24  ;;  %v3932_v23 = vld [vmem:[%s4167_s21 + $0x90] sm:$0xff]  ;;  %v3933_v24 = vld [vmem:[%s4167_s21 + $0xa8] sm:$0xff] }
 0x414   : > { %3726 = vmatpush1.bf16.msra.mxu1 %v3725_v25  ;;  %v3934_v25 = vld [vmem:[%s4167_s21 + $0xa0] sm:$0xff] }
 0x415   : > { %3727 = vmatprep.subr.bf16.mxu1 %v3985_v56 }
 0x418   : > { %v3352_v26 = vpop.f32.mrb[84].mxu0 }
 0x419   : > { %v1673_v27 = vpop.f32.mrb[85].mxu0 }
 0x41a   : > { %v3728_v28 = vpack.c.bf16 %v3352_v26, %v1673_v27  ;;  %v3935_v26 = vld [vmem:[%s4167_s21 + $0xb8] sm:$0xff]  ;;  %v3936_v27 = vld [vmem:[%s4167_s21 + $0xb0] sm:$0xff] }
 0x41c   : > { %3729 = vmatpush1.bf16.msra.mxu1 %v3728_v28  ;;  %v3937_v28 = vld [vmem:[%s4167_s21 + $0xc8] sm:$0xff] }
 0x41d   : > { %3730 = vmatprep.subr.bf16.mxu1 %v3985_v56 }
 0x420   : > { %v3355_v29 = vpop.f32.mrb[86].mxu0 }
 0x421   : > { %v1683_v32 = vpop.f32.mrb[87].mxu0 }
 0x422   : > { %v3731_v35 = vpack.c.bf16 %v3355_v29, %v1683_v32  ;;  %v3938_v29 = vld [vmem:[%s4167_s21 + $0xc0] sm:$0xff]  ;;  %v3939_v32 = vld [vmem:[%s4167_s21 + $0xd8] sm:$0xff] }
 0x424   : > { %3732 = vmatpush1.bf16.msra.mxu1 %v3731_v35  ;;  %v3940_v35 = vld [vmem:[%s4167_s21 + $0xd0] sm:$0xff] }
 0x425   : > { %3733 = vmatprep.subr.bf16.mxu1 %v3985_v56 }
 0x428   : > { %v3358_v36 = vpop.f32.mrb[88].mxu0 }
 0x429   : > { %v1693_v38 = vpop.f32.mrb[89].mxu0 }
 0x42a   : > { %v3734_v40 = vpack.c.bf16 %v3358_v36, %v1693_v38  ;;  %v3941_v36 = vld [vmem:[%s4167_s21 + $0xe8] sm:$0xff]  ;;  %v3942_v38 = vld [vmem:[%s4167_s21 + $0xe0] sm:$0xff] }
 0x42c   : > { %3735 = vmatpush1.bf16.msra.mxu1 %v3734_v40  ;;  %v3943_v40 = vld [vmem:[%s4167_s21 + $0xf8] sm:$0xff] }
 0x42d   : > { %3736 = vmatprep.subr.bf16.mxu1 %v3985_v56 }
 0x430   : > { %v3361_v41 = vpop.f32.mrb[90].mxu0 }
 0x431   : > { %v1703_v42 = vpop.f32.mrb[91].mxu0 }
 0x432   : > { %v3737_v43 = vpack.c.bf16 %v3361_v41, %v1703_v42  ;;  %v3944_v41 = vld [vmem:[%s4167_s21 + $0xf0] sm:$0xff]  ;;  %v3945_v42 = vld [vmem:[%s4167_s21 + $0x108] sm:$0xff] }
 0x434   : > { %3738 = vmatpush1.bf16.msra.mxu1 %v3737_v43  ;;  %v3946_v43 = vld [vmem:[%s4167_s21 + $0x100] sm:$0xff] }
 0x435   : > { %3739 = vmatprep.subr.bf16.mxu1 %v3985_v56 }
 0x438   : > { %v3364_v45 = vpop.f32.mrb[92].mxu0 }
 0x439   : > { %v1713_v46 = vpop.f32.mrb[93].mxu0 }
 0x43a   : > { %v3740_v47 = vpack.c.bf16 %v3364_v45, %v1713_v46  ;;  %v3947_v45 = vld [vmem:[%s4167_s21 + $0x118] sm:$0xff]  ;;  %v3948_v46 = vld [vmem:[%s4167_s21 + $0x110] sm:$0xff] }
 0x43c   : > { %3741 = vmatpush1.bf16.msra.mxu1 %v3740_v47  ;;  %v3949_v47 = vld [vmem:[%s4167_s21 + $0x128] sm:$0xff] }
 0x43d   : > { %3742 = vmatprep.subr.bf16.mxu1 %v3985_v56  ;;  %v1960_v56 = vld [vmem:[%s4953_s7 + $0x18] sm:$0xff] }
 0x43e   : > { %v3749_v55 = vpack.c.bf16 %v1960_v56, %v1959_v53  ;;  %v3955_v53 = vld [vmem:[%s4167_s21 + $0x158] sm:$0xff] }
 0x43f   : > { %v1972_v56 = vld [vmem:[%s4953_s7 + $0x78] sm:$0xff] }
 0x440   : > { %v3367_v48 = vpop.f32.mrb[94].mxu0  ;;  %3750 = vmatprep.subr.bf16.mxu0 %v3749_v55 }
 0x441   : > { %v1723_v49 = vpop.f32.mrb[95].mxu0  ;;  %3752 = vmatpush3.bf16.msra.mxu0 %v3749_v55  ;;  %v3773_v55 = vpack.c.bf16 %v1972_v56, %v1971_v54 }
 0x442   : > { %v3743_v50 = vpack.c.bf16 %v3367_v48, %v1723_v49  ;;  %3754 = vmatprep.subr.bf16.mxu0 %v3753_v62  ;;  %v3950_v48 = vld [vmem:[%s4167_s21 + $0x120] sm:$0xff]  ;;  %v3951_v49 = vld [vmem:[%s4167_s21 + $0x138] sm:$0xff] }
 0x444   : > { %3744 = vmatpush1.bf16.msra.mxu1 %v3743_v50  ;;  %v3952_v50 = vld [vmem:[%s4167_s21 + $0x130] sm:$0xff] }
 0x445   : > { %3756 = vmatpush3.bf16.msra.mxu0 %v3753_v62  ;;  %v3960_v62 = vld [vmem:[%s4167_s21 + $0x170] sm:$0xff] }
 0x446   : > { %3758 = vmatprep.subr.bf16.mxu0 %v3757_v2 }
 0x447   : > { %1797 = vmatmul.mubr.f32.vlgmr.msra.gmra.mrb[64].mxu1 %v3914_v60  ;;  %v3958_v60 = vld [vmem:[%s4167_s21 + $0x160] sm:$0xff] }
 0x448   : > { %1801 = vmatprep.mubr.f32.mxu1 %v3915_v61  ;;  %v3959_v61 = vld [vmem:[%s4167_s21 + $0x178] sm:$0xff] }
 0x449   : > { %3760 = vmatpush3.bf16.msra.mxu0 %v3757_v2  ;;  %v3965_v2 = vld [vmem:[%s4167_s21 + $0x1a8] sm:$0xff] }
 0x44a   : > { %3762 = vmatprep.subr.bf16.mxu0 %v3761_v6 }
 0x44b   : > { %1802 = vmatmul.mubr.f32.gmra.mrb[66].mxu1 %v3916_v0  ;;  %v3963_v0 = vld [vmem:[%s4167_s21 + $0x198] sm:$0xff] }
 0x44c   : > { %1806 = vmatprep.mubr.f32.mxu1 %v3917_v1  ;;  %v3964_v1 = vld [vmem:[%s4167_s21 + $0x190] sm:$0xff] }
 0x44d   : > { %3764 = vmatpush3.bf16.msra.mxu0 %v3761_v6  ;;  %v3970_v6 = vld [vmem:[%s4167_s21 + $0x1c0] sm:$0xff] }
 0x44e   : > { %3766 = vmatprep.subr.bf16.mxu0 %v3765_v10 }
 0x44f   : > { %1807 = vmatmul.mubr.f32.gmra.mrb[68].mxu1 %v3918_v5  ;;  %v3968_v5 = vld [vmem:[%s4167_s21 + $0x1b0] sm:$0xff] }
 0x450   : > { %1811 = vmatprep.mubr.f32.mxu1 %v3919_v39  ;;  %v3969_v39 = vld [vmem:[%s4167_s21 + $0x1c8] sm:$0xff] }
 0x451   : > { %3768 = vmatpush3.bf16.msra.mxu0 %v3765_v10  ;;  %v3975_v10 = vld [vmem:[%s4167_s21 + $0x1f8] sm:$0xff] }
 0x452   : > { %3770 = vmatprep.subr.bf16.mxu0 %v3769_v14 }
 0x453   : > { %1812 = vmatmul.mubr.f32.gmra.mrb[70].mxu1 %v3920_v8  ;;  %v3973_v8 = vld [vmem:[%s4167_s21 + $0x1e8] sm:$0xff] }
 0x454   : > { %1816 = vmatprep.mubr.f32.mxu1 %v3921_v9  ;;  %v3974_v9 = vld [vmem:[%s4167_s21 + $0x1e0] sm:$0xff] }
 0x455   : > { %3772 = vmatpush3.bf16.msra.mxu0 %v3769_v14 }
 0x456   : > { %3774 = vmatprep.subr.bf16.mxu0 %v3773_v55 }
 0x457   : > { %1817 = vmatmul.mubr.f32.gmra.mrb[72].mxu1 %v3922_v12 }
 0x458   : > { %1821 = vmatprep.mubr.f32.mxu1 %v3923_v13 }
 0x459   : > { %3776 = vmatpush3.bf16.msra.mxu0 %v3773_v55 }
 0x45b   : > { %1822 = vmatmul.mubr.f32.gmra.mrb[74].mxu1 %v3924_v15 }
 0x45c   : > { %1826 = vmatprep.mubr.f32.mxu1 %v3925_v16 }
 0x45f   : > { %1827 = vmatmul.mubr.f32.gmra.mrb[76].mxu1 %v3926_v17 }
 0x460   : > { %1831 = vmatprep.mubr.f32.mxu1 %v3927_v18 }
 0x463   : > { %1832 = vmatmul.mubr.f32.gmra.mrb[78].mxu1 %v3928_v19 }
 0x464   : > { %1836 = vmatprep.mubr.f32.mxu1 %v3929_v20 }
 0x467   : > { %1837 = vmatmul.mubr.f32.gmra.mrb[80].mxu1 %v3930_v21 }
 0x468   : > { %1841 = vmatprep.mubr.f32.mxu1 %v3931_v22 }
 0x46b   : > { %1842 = vmatmul.mubr.f32.gmra.mrb[82].mxu1 %v3932_v23 }
 0x46c   : > { %1846 = vmatprep.mubr.f32.mxu1 %v3933_v24 }
 0x46f   : > { %1847 = vmatmul.mubr.f32.gmra.mrb[84].mxu1 %v3934_v25 }
 0x470   : > { %1851 = vmatprep.mubr.f32.mxu1 %v3935_v26 }
 0x473   : > { %1852 = vmatmul.mubr.f32.gmra.mrb[86].mxu1 %v3936_v27 }
 0x474   : > { %1856 = vmatprep.mubr.f32.mxu1 %v3937_v28 }
 0x477   : > { %1857 = vmatmul.mubr.f32.gmra.mrb[88].mxu1 %v3938_v29 }
 0x478   : > { %1861 = vmatprep.mubr.f32.mxu1 %v3939_v32 }
 0x47b   : > { %1862 = vmatmul.mubr.f32.gmra.mrb[90].mxu1 %v3940_v35 }
 0x47c   : > { %1866 = vmatprep.mubr.f32.mxu1 %v3941_v36 }
 0x47f   : > { %1867 = vmatmul.mubr.f32.gmra.mrb[92].mxu1 %v3942_v38 }
 0x480   : > { %1871 = vmatprep.mubr.f32.mxu1 %v3943_v40 }
 0x483   : > { %1872 = vmatmul.mubr.f32.gmra.mrb[94].mxu1 %v3944_v41 }
 0x484   : > { %1876 = vmatprep.mubr.f32.mxu1 %v3945_v42 }
 0x487   : > { %1877 = vmatmul.mubr.f32.gmra.mrb[96].mxu1 %v3946_v43 }
 0x488   : > { %1881 = vmatprep.mubr.f32.mxu1 %v3947_v45 }
 0x48b   : > { %1882 = vmatmul.mubr.f32.gmra.mrb[98].mxu1 %v3948_v46 }
 0x48c   : > { %1886 = vmatprep.mubr.f32.mxu1 %v3949_v47 }
 0x48f   : > { %1887 = vmatmul.mubr.f32.gmra.mrb[100].mxu1 %v3950_v48 }
 0x490   : > { %1891 = vmatprep.mubr.f32.mxu1 %v3951_v49 }
 0x493   : > { %1892 = vmatmul.mubr.f32.gmra.mrb[102].mxu1 %v3952_v50 }
 0x494   : > { %1896 = vmatprep.mubr.f32.mxu1 %v3953_v51 }
 0x497   : > { %1897 = vmatmul.mubr.f32.gmra.mrb[104].mxu1 %v3954_v52 }
 0x498   : > { %1901 = vmatprep.mubr.f32.mxu1 %v3955_v53 }
 0x49b   : > { %1902 = vmatmul.mubr.f32.gmra.mrb[106].mxu1 %v3956_v58 }
 0x49c   : > { %1906 = vmatprep.mubr.f32.mxu1 %v3957_v59 }
 0x49f   : > { %1907 = vmatmul.mubr.f32.gmra.mrb[108].mxu1 %v3958_v60 }
 0x4a0   : > { %1911 = vmatprep.mubr.f32.mxu1 %v3959_v61 }
 0x4a3   : > { %1912 = vmatmul.mubr.f32.gmra.mrb[110].mxu1 %v3960_v62 }
 0x4a4   : > { %1916 = vmatprep.mubr.f32.mxu1 %v3961_v63 }
 0x4a7   : > { %1917 = vmatmul.mubr.f32.gmra.mrb[112].mxu1 %v3962_v33 }
 0x4a8   : > { %1921 = vmatprep.mubr.f32.mxu1 %v3963_v0 }
 0x4ab   : > { %1922 = vmatmul.mubr.f32.gmra.mrb[114].mxu1 %v3964_v1 }
 0x4ac   : > { %1926 = vmatprep.mubr.f32.mxu1 %v3965_v2 }
 0x4af   : > { %1927 = vmatmul.mubr.f32.gmra.mrb[116].mxu1 %v3966_v3 }
 0x4b0   : > { %1931 = vmatprep.mubr.f32.mxu1 %v3967_v4 }
 0x4b3   : > { %1932 = vmatmul.mubr.f32.gmra.mrb[118].mxu1 %v3968_v5 }
 0x4b4   : > { %1936 = vmatprep.mubr.f32.mxu1 %v3969_v39 }
 0x4b7   : > { %1937 = vmatmul.mubr.f32.gmra.mrb[120].mxu1 %v3970_v6 }
 0x4b8   : > { %1941 = vmatprep.mubr.f32.mxu1 %v3971_v44 }
 0x4bb   : > { %1942 = vmatmul.mubr.f32.gmra.mrb[122].mxu1 %v3972_v7 }
 0x4bc   : > { %1946 = vmatprep.mubr.f32.mxu1 %v3973_v8 }
 0x4bf   : > { %1947 = vmatmul.mubr.f32.gmra.mrb[124].mxu1 %v3974_v9 }
 0x4c0   : > { %1951 = vmatprep.mubr.f32.mxu1 %v3975_v10 }
 0x4c3   : > { %1952 = vmatmul.mubr.f32.gmra.mrb[126].mxu1 %v3976_v57 }
 0x51a   : > { %v1798_v11 = vpop.f32.mrb[64].mxu1 }
 0x51b   : > { %v1800_v12 = vpop.f32.mrb[65].mxu1  ;;  %3400 = vmatprep.mubr.f32.mxu0 %v1798_v11 }
 0x51e   : > { %v1803_v13 = vpop.f32.mrb[66].mxu1 }
 0x51f   : > { %v1805_v14 = vpop.f32.mrb[67].mxu1  ;;  %3401 = vmatmul.mubr.f32.vlgmr.msra.gmra.mrb[96].mxu0 %v1803_v13 }
 0x522   : > { %v1808_v15 = vpop.f32.mrb[68].mxu1 }
 0x523   : > { %v1810_v16 = vpop.f32.mrb[69].mxu1  ;;  %3403 = vmatprep.mubr.f32.mxu0 %v1808_v15  ;;  %v1973_v15 = vld [vmem:[%s4954_s8] sm:$0x7] }
 0x524   : > { %v4596_v16 = vrot.slane %v1973_v15, %v1096_v31 }
 0x526   : > { %v1813_v17 = vpop.f32.mrb[70].mxu1 }
 0x527   : > { %v1815_v18 = vpop.f32.mrb[71].mxu1  ;;  %3404 = vmatmul.mubr.f32.gmra.mrb[98].mxu0 %v1813_v17 }
 0x52a   : > { %v1818_v19 = vpop.f32.mrb[72].mxu1 }
 0x52b   : > { %v1820_v20 = vpop.f32.mrb[73].mxu1  ;;  %3406 = vmatprep.mubr.f32.mxu0 %v1818_v19 }
 0x52c   : > { %v4601_v20 = vrot.slane %v1973_v15, %v1421_v34 }
 0x52e   : > { %v1823_v21 = vpop.f32.mrb[74].mxu1 }
 0x52f   : > { %v1825_v22 = vpop.f32.mrb[75].mxu1  ;;  %3407 = vmatmul.mubr.f32.gmra.mrb[100].mxu0 %v1823_v21 }
 0x532   : > { %v1828_v23 = vpop.f32.mrb[76].mxu1 }
 0x533   : > { %v1830_v24 = vpop.f32.mrb[77].mxu1  ;;  %3409 = vmatprep.mubr.f32.mxu0 %v1828_v23  ;;  %v4606_v23 = vrot.slane %v1973_v15, %v1457_v37 }
 0x536   : > { %v1833_v25 = vpop.f32.mrb[78].mxu1 }
 0x537   : > { %v1835_v26 = vpop.f32.mrb[79].mxu1  ;;  %3410 = vmatmul.mubr.f32.gmra.mrb[102].mxu0 %v1833_v25 }
 0x53a   : > { %v1838_v27 = vpop.f32.mrb[80].mxu1 }
 0x53b   : > { %v1840_v28 = vpop.f32.mrb[81].mxu1  ;;  %3412 = vmatprep.mubr.f32.mxu0 %v1838_v27  ;;  %v2372_v27 = vld [vmem:[%s4948_s2 + $0x8] sm:$0xff] }
 0x53e   : > { %v1843_v29 = vpop.f32.mrb[82].mxu1 }
 0x53f   : > { %v1845_v32 = vpop.f32.mrb[83].mxu1  ;;  %3413 = vmatmul.mubr.f32.gmra.mrb[104].mxu0 %v1843_v29 }
 0x542   : > { %v1848_v35 = vpop.f32.mrb[84].mxu1 }
 0x543   : > { %v1850_v36 = vpop.f32.mrb[85].mxu1  ;;  %3415 = vmatprep.mubr.f32.mxu0 %v1848_v35 }
 0x546   : > { %v1853_v38 = vpop.f32.mrb[86].mxu1 }
 0x547   : > { %v1855_v40 = vpop.f32.mrb[87].mxu1  ;;  %3416 = vmatmul.mubr.f32.gmra.mrb[106].mxu0 %v1853_v38 }
 0x54a   : > { %v1858_v41 = vpop.f32.mrb[88].mxu1 }
 0x54b   : > { %v1860_v42 = vpop.f32.mrb[89].mxu1  ;;  %3418 = vmatprep.mubr.f32.mxu0 %v1858_v41 }
 0x54e   : > { %v1863_v43 = vpop.f32.mrb[90].mxu1 }
 0x54f   : > { %v1865_v45 = vpop.f32.mrb[91].mxu1  ;;  %3419 = vmatmul.mubr.f32.gmra.mrb[108].mxu0 %v1863_v43 }
 0x552   : > { %v1868_v46 = vpop.f32.mrb[92].mxu1 }
 0x553   : > { %v1870_v47 = vpop.f32.mrb[93].mxu1  ;;  %3421 = vmatprep.mubr.f32.mxu0 %v1868_v46 }
 0x556   : > { %v1873_v48 = vpop.f32.mrb[94].mxu1 }
 0x557   : > { %v1875_v49 = vpop.f32.mrb[95].mxu1  ;;  %3422 = vmatmul.mubr.f32.gmra.mrb[110].mxu0 %v1873_v48 }
 0x55a   : > { %v1878_v50 = vpop.f32.mrb[96].mxu1 }
 0x55b   : > { %v1880_v51 = vpop.f32.mrb[97].mxu1  ;;  %3424 = vmatprep.mubr.f32.mxu0 %v1878_v50 }
 0x55e   : > { %v1883_v52 = vpop.f32.mrb[98].mxu1 }
 0x55f   : > { %v1885_v53 = vpop.f32.mrb[99].mxu1  ;;  %3425 = vmatmul.mubr.f32.gmra.mrb[112].mxu0 %v1883_v52 }
 0x562   : > { %v1888_v54 = vpop.f32.mrb[100].mxu1 }
 0x563   : > { %v1890_v56 = vpop.f32.mrb[101].mxu1  ;;  %3427 = vmatprep.mubr.f32.mxu0 %v1888_v54 }
 0x566   : > { %v1893_v55 = vpop.f32.mrb[102].mxu1 }
 0x567   : > { %v1895_v58 = vpop.f32.mrb[103].mxu1  ;;  %3428 = vmatmul.mubr.f32.gmra.mrb[114].mxu0 %v1893_v55 }
 0x56a   : > { %v1898_v59 = vpop.f32.mrb[104].mxu1 }
 0x56b   : > { %v1900_v60 = vpop.f32.mrb[105].mxu1  ;;  %3430 = vmatprep.mubr.f32.mxu0 %v1898_v59 }
 0x56e   : > { %v1903_v61 = vpop.f32.mrb[106].mxu1 }
 0x56f   : > { %v1905_v62 = vpop.f32.mrb[107].mxu1  ;;  %3431 = vmatmul.mubr.f32.gmra.mrb[116].mxu0 %v1903_v61 }
 0x572   : > { %v1908_v63 = vpop.f32.mrb[108].mxu1 }
 0x573   : > { %v1910_v33 = vpop.f32.mrb[109].mxu1  ;;  %3433 = vmatprep.mubr.f32.mxu0 %v1908_v63 }
 0x576   : > { %v1913_v0 = vpop.f32.mrb[110].mxu1 }
 0x577   : > { %v1915_v1 = vpop.f32.mrb[111].mxu1  ;;  %3434 = vmatmul.mubr.f32.gmra.mrb[118].mxu0 %v1913_v0 }
 0x57a   : > { %v1918_v2 = vpop.f32.mrb[112].mxu1 }
 0x57b   : > { %v1920_v3 = vpop.f32.mrb[113].mxu1  ;;  %3436 = vmatprep.mubr.f32.mxu0 %v1918_v2 }
 0x57e   : > { %v1923_v4 = vpop.f32.mrb[114].mxu1 }
 0x57f   : > { %v1925_v5 = vpop.f32.mrb[115].mxu1  ;;  %3437 = vmatmul.mubr.f32.gmra.mrb[120].mxu0 %v1923_v4 }
 0x582   : > { %v1928_v39 = vpop.f32.mrb[116].mxu1 }
 0x583   : > { %v1930_v6 = vpop.f32.mrb[117].mxu1  ;;  %3439 = vmatprep.mubr.f32.mxu0 %v1928_v39 }
 0x586   : > { %v1933_v44 = vpop.f32.mrb[118].mxu1 }
 0x587   : > { %v1935_v7 = vpop.f32.mrb[119].mxu1  ;;  %3440 = vmatmul.mubr.f32.gmra.mrb[122].mxu0 %v1933_v44 }
 0x58a   : > { %v1938_v8 = vpop.f32.mrb[120].mxu1 }
 0x58b   : > { %v1940_v9 = vpop.f32.mrb[121].mxu1  ;;  %3442 = vmatprep.mubr.f32.mxu0 %v1938_v8 }
 0x58e   : > { %v1943_v10 = vpop.f32.mrb[122].mxu1 }
 0x58f   : > { %v1945_v57 = vpop.f32.mrb[123].mxu1  ;;  %3443 = vmatmul.mubr.f32.gmra.mrb[124].mxu0 %v1943_v10 }
 0x592   : > { %v1948_v11 = vpop.f32.mrb[124].mxu1 }
 0x593   : > { %v1950_v12 = vpop.f32.mrb[125].mxu1  ;;  %3445 = vmatprep.mubr.f32.mxu0 %v1948_v11 }
 0x596   : > { %v1953_v13 = vpop.f32.mrb[126].mxu1 }
 0x597   : > { %v1955_v14 = vpop.f32.mrb[127].mxu1  ;;  %3446 = vmatmul.mubr.f32.gmra.mrb[126].mxu0 %v1953_v13 }
 0x598   : > { %2439 = vmatprep.mubr.f32.mxu0 %v2372_v27 }
 0x5f2   : > { %v3402_v17 = vpop.f32.mrb[96].mxu0 }
 0x5f3   : > { %v2050_v18 = vadd.f32 %v3402_v17, %v4596_v16  ;;  %v2044_v19 = vpop.f32.mrb[97].mxu0 }
 0x5f4   : > { %v2045_v21 = vadd.f32 %v2044_v19, %v4596_v16 }
 0x5f5   : > { %vm2204_vm0 = vcmp.gt.f32.partialorder %v2050_v18, 0.0  ;;  %v2236_v22 = vmul.f32 0.2, %v2050_v18 }
 0x5f6   : > { %vm2203_vm1 = vcmp.gt.f32.partialorder %v2045_v21, 0.0  ;;  %v2235_v24 = vmul.f32 0.2, %v2045_v21 }
 0x5f7   : > { %v2268_v31 = vsel %vm2204_vm0, %v2050_v18, %v2236_v22 }
 0x5f8   : > { %v2304_v25 = vmul.f32 %v4601_v20, %v2268_v31  ;;  %v2267_v26 = vsel %vm2203_vm1, %v2045_v21, %v2235_v24 }
 0x5f9   : > { %v2303_v34 = vmul.f32 %v4601_v20, %v2267_v26 }
 0x5fa   : > { %v4614_v28 = vadd.f32 %v4606_v23, %v2304_v25  ;;  %v3405_v29 = vpop.f32.mrb[98].mxu0 }
 0x5fb   : > { %v4617_v30 = vadd.f32 %v4606_v23, %v2303_v34  ;;  %v2060_v37 = vadd.f32 %v3405_v29, %v4596_v16  ;;  %v2054_v32 = vpop.f32.mrb[99].mxu0 }
 0x5fc   : > { %v2055_v35 = vadd.f32 %v2054_v32, %v4596_v16 }
 0x5fd   : > { %vm2206_vm2 = vcmp.gt.f32.partialorder %v2060_v37, 0.0  ;;  %v2238_v36 = vmul.f32 0.2, %v2060_v37  ;;  %v3779_v38 = vpack.c.bf16 %v4614_v28, %v4617_v30 }
 0x5fe   : > { %vm2205_vm3 = vcmp.gt.f32.partialorder %v2055_v35, 0.0  ;;  %v2237_v40 = vmul.f32 0.2, %v2055_v35 }
 0x5ff   : > { %v2270_v41 = vsel %vm2206_vm2, %v2060_v37, %v2238_v36 }
 0x600   : > { %v2306_v42 = vmul.f32 %v4601_v20, %v2270_v41  ;;  %v2269_v43 = vsel %vm2205_vm3, %v2055_v35, %v2237_v40 }
 0x601   : > { %v2305_v45 = vmul.f32 %v4601_v20, %v2269_v43 }
 0x602   : > { %v4626_v46 = vadd.f32 %v4606_v23, %v2306_v42  ;;  %v3408_v47 = vpop.f32.mrb[100].mxu0 }
 0x603   : > { %v4629_v48 = vadd.f32 %v4606_v23, %v2305_v45  ;;  %v2070_v49 = vadd.f32 %v3408_v47, %v4596_v16  ;;  %v2064_v50 = vpop.f32.mrb[101].mxu0 }
 0x604   : > { %v2065_v51 = vadd.f32 %v2064_v50, %v4596_v16 }
 0x605   : > { %vm2208_vm4 = vcmp.gt.f32.partialorder %v2070_v49, 0.0  ;;  %v2240_v52 = vmul.f32 0.2, %v2070_v49  ;;  %v3783_v53 = vpack.c.bf16 %v4626_v46, %v4629_v48 }
 0x606   : > { %vm2207_vm5 = vcmp.gt.f32.partialorder %v2065_v51, 0.0  ;;  %v2239_v54 = vmul.f32 0.2, %v2065_v51 }
 0x607   : > { %v2272_v56 = vsel %vm2208_vm4, %v2070_v49, %v2240_v52 }
 0x608   : > { %v2308_v55 = vmul.f32 %v4601_v20, %v2272_v56  ;;  %v2271_v58 = vsel %vm2207_vm5, %v2065_v51, %v2239_v54 }
 0x609   : > { %v2307_v59 = vmul.f32 %v4601_v20, %v2271_v58 }
 0x60a   : > { %v4638_v60 = vadd.f32 %v4606_v23, %v2308_v55  ;;  %v3411_v61 = vpop.f32.mrb[102].mxu0 }
 0x60b   : > { %v4641_v62 = vadd.f32 %v4606_v23, %v2307_v59  ;;  %v2080_v63 = vadd.f32 %v3411_v61, %v4596_v16  ;;  %v2074_v33 = vpop.f32.mrb[103].mxu0 }
 0x60c   : > { %v2075_v0 = vadd.f32 %v2074_v33, %v4596_v16 }
 0x60d   : > { %vm2210_vm6 = vcmp.gt.f32.partialorder %v2080_v63, 0.0  ;;  %v2242_v1 = vmul.f32 0.2, %v2080_v63  ;;  %v3787_v2 = vpack.c.bf16 %v4638_v60, %v4641_v62 }
 0x60e   : > { %vm2209_vm7 = vcmp.gt.f32.partialorder %v2075_v0, 0.0  ;;  %v2241_v3 = vmul.f32 0.2, %v2075_v0 }
 0x60f   : > { %v2274_v4 = vsel %vm2210_vm6, %v2080_v63, %v2242_v1 }
 0x610   : > { %v2310_v5 = vmul.f32 %v4601_v20, %v2274_v4  ;;  %v2273_v39 = vsel %vm2209_vm7, %v2075_v0, %v2241_v3 }
 0x611   : > { %v2309_v6 = vmul.f32 %v4601_v20, %v2273_v39 }
 0x612   : > { %v4650_v44 = vadd.f32 %v4606_v23, %v2310_v5  ;;  %v3414_v7 = vpop.f32.mrb[104].mxu0 }
 0x613   : > { %v4653_v8 = vadd.f32 %v4606_v23, %v2309_v6  ;;  %v2090_v9 = vadd.f32 %v3414_v7, %v4596_v16  ;;  %v2084_v10 = vpop.f32.mrb[105].mxu0 }
 0x614   : > { %v2085_v57 = vadd.f32 %v2084_v10, %v4596_v16 }
 0x615   : > { %vm2212_vm8 = vcmp.gt.f32.partialorder %v2090_v9, 0.0  ;;  %v2244_v11 = vmul.f32 0.2, %v2090_v9  ;;  %v3791_v12 = vpack.c.bf16 %v4650_v44, %v4653_v8 }
 0x616   : > { %vm2211_vm9 = vcmp.gt.f32.partialorder %v2085_v57, 0.0  ;;  %v2243_v13 = vmul.f32 0.2, %v2085_v57 }
 0x617   : > { %v2276_v14 = vsel %vm2212_vm8, %v2090_v9, %v2244_v11 }
 0x618   : > { %v2312_v15 = vmul.f32 %v4601_v20, %v2276_v14  ;;  %v2275_v17 = vsel %vm2211_vm9, %v2085_v57, %v2243_v13 }
 0x619   : > { %v2311_v18 = vmul.f32 %v4601_v20, %v2275_v17 }
 0x61a   : > { %v4662_v19 = vadd.f32 %v4606_v23, %v2312_v15  ;;  %v3417_v21 = vpop.f32.mrb[106].mxu0 }
 0x61b   : > { %v4665_v22 = vadd.f32 %v4606_v23, %v2311_v18  ;;  %v2100_v24 = vadd.f32 %v3417_v21, %v4596_v16  ;;  %v2094_v31 = vpop.f32.mrb[107].mxu0 }
 0x61c   : > { %v2095_v25 = vadd.f32 %v2094_v31, %v4596_v16 }
 0x61d   : > { %vm2214_vm10 = vcmp.gt.f32.partialorder %v2100_v24, 0.0  ;;  %v2246_v26 = vmul.f32 0.2, %v2100_v24  ;;  %v3795_v27 = vpack.c.bf16 %v4662_v19, %v4665_v22 }
 0x61e   : > { %vm2213_vm11 = vcmp.gt.f32.partialorder %v2095_v25, 0.0  ;;  %v2245_v34 = vmul.f32 0.2, %v2095_v25 }
 0x61f   : > { %v2278_v29 = vsel %vm2214_vm10, %v2100_v24, %v2246_v26 }
 0x620   : > { %v2314_v37 = vmul.f32 %v4601_v20, %v2278_v29  ;;  %v2277_v32 = vsel %vm2213_vm11, %v2095_v25, %v2245_v34 }
 0x621   : > { %v2313_v35 = vmul.f32 %v4601_v20, %v2277_v32 }
 0x622   : > { %v4674_v36 = vadd.f32 %v4606_v23, %v2314_v37  ;;  %v3420_v40 = vpop.f32.mrb[108].mxu0 }
 0x623   : > { %v4677_v41 = vadd.f32 %v4606_v23, %v2313_v35  ;;  %v2110_v42 = vadd.f32 %v3420_v40, %v4596_v16  ;;  %v2104_v43 = vpop.f32.mrb[109].mxu0 }
 0x624   : > { %v2105_v45 = vadd.f32 %v2104_v43, %v4596_v16 }
 0x625   : > { %vm2216_vm12 = vcmp.gt.f32.partialorder %v2110_v42, 0.0  ;;  %v2248_v47 = vmul.f32 0.2, %v2110_v42  ;;  %v3799_v49 = vpack.c.bf16 %v4674_v36, %v4677_v41 }
 0x626   : > { %vm2215_vm13 = vcmp.gt.f32.partialorder %v2105_v45, 0.0  ;;  %v2247_v50 = vmul.f32 0.2, %v2105_v45 }
 0x627   : > { %v2280_v51 = vsel %vm2216_vm12, %v2110_v42, %v2248_v47 }
 0x628   : > { %v2316_v52 = vmul.f32 %v4601_v20, %v2280_v51  ;;  %v2279_v54 = vsel %vm2215_vm13, %v2105_v45, %v2247_v50 }
 0x629   : > { %v2315_v56 = vmul.f32 %v4601_v20, %v2279_v54 }
 0x62a   : > { %v4686_v55 = vadd.f32 %v4606_v23, %v2316_v52  ;;  %v3423_v58 = vpop.f32.mrb[110].mxu0 }
 0x62b   : > { %v4689_v59 = vadd.f32 %v4606_v23, %v2315_v56  ;;  %v2120_v61 = vadd.f32 %v3423_v58, %v4596_v16  ;;  %v2114_v63 = vpop.f32.mrb[111].mxu0 }
 0x62c   : > { %v2115_v33 = vadd.f32 %v2114_v63, %v4596_v16 }
 0x62d   : > { %vm2218_vm14 = vcmp.gt.f32.partialorder %v2120_v61, 0.0  ;;  %v2250_v0 = vmul.f32 0.2, %v2120_v61  ;;  %v3803_v1 = vpack.c.bf16 %v4686_v55, %v4689_v59  ;;  %v2452_v55 = vld [vmem:[%s4955_s9 + $0x10] sm:$0xff]  ;;  %v2371_v59 = vld [vmem:[%s4948_s2] sm:$0xff] }
 0x62e   : > { %vm2217_vm15 = vcmp.gt.f32.partialorder %v2115_v33, 0.0  ;;  %v2249_v3 = vmul.f32 0.2, %v2115_v33 }
 0x62f   : > { %v2282_v4 = vsel %vm2218_vm14, %v2120_v61, %v2250_v0 }
 0x630   : > { %v2318_v5 = vmul.f32 %v4601_v20, %v2282_v4  ;;  %v2281_v39 = vsel %vm2217_vm15, %v2115_v33, %v2249_v3 }
 0x631   : > { %v2317_v6 = vmul.f32 %v4601_v20, %v2281_v39 }
 0x632   : > { %v4698_v7 = vadd.f32 %v4606_v23, %v2318_v5  ;;  %v3426_v9 = vpop.f32.mrb[112].mxu0 }
 0x633   : > { %v4701_v10 = vadd.f32 %v4606_v23, %v2317_v6  ;;  %v2130_v57 = vadd.f32 %v3426_v9, %v4596_v16  ;;  %v2124_v11 = vpop.f32.mrb[113].mxu0 }
 0x634   : > { %v2125_v13 = vadd.f32 %v2124_v11, %v4596_v16 }
 0x635   : > { %vm2220_vm0 = vcmp.gt.f32.partialorder %v2130_v57, 0.0  ;;  %v2252_v14 = vmul.f32 0.2, %v2130_v57  ;;  %v3807_v15 = vpack.c.bf16 %v4698_v7, %v4701_v10  ;;  %v2373_v7 = vld [vmem:[%s4948_s2 + $0x10] sm:$0xff] }
 0x636   : > { %vm2219_vm1 = vcmp.gt.f32.partialorder %v2125_v13, 0.0  ;;  %v2251_v17 = vmul.f32 0.2, %v2125_v13 }
 0x637   : > { %v2284_v18 = vsel %vm2220_vm0, %v2130_v57, %v2252_v14 }
 0x638   : > { %v2320_v21 = vmul.f32 %v4601_v20, %v2284_v18  ;;  %v2283_v24 = vsel %vm2219_vm1, %v2125_v13, %v2251_v17 }
 0x639   : > { %v2319_v31 = vmul.f32 %v4601_v20, %v2283_v24 }
 0x63a   : > { %v3429_v25 = vpop.f32.mrb[114].mxu0  ;;  %v2356_v26 = vadd.f32 %v4606_v23, %v2320_v21 }
 0x63b   : > { %v2140_v34 = vadd.f32 %v3429_v25, %v4596_v16  ;;  %v2134_v29 = vpop.f32.mrb[115].mxu0  ;;  %v2355_v37 = vadd.f32 %v4606_v23, %v2319_v31 }
 0x63c   : > { %v2135_v32 = vadd.f32 %v2134_v29, %v4596_v16 }
 0x63d   : > { %vm2222_vm2 = vcmp.gt.f32.partialorder %v2140_v34, 0.0  ;;  %v2254_v35 = vmul.f32 0.2, %v2140_v34  ;;  %v3777_v40 = vpack.c.bf16 %v2356_v26, %v2355_v37 }
 0x63e   : > { %vm2221_vm3 = vcmp.gt.f32.partialorder %v2135_v32, 0.0  ;;  %v2253_v42 = vmul.f32 0.2, %v2135_v32 }
 0x63f   : > { %v2286_v43 = vsel %vm2222_vm2, %v2140_v34, %v2254_v35  ;;  %3778 = vmatprep.subr.bf16.mxu0 %v3777_v40 }
 0x640   : > { %v2322_v45 = vmul.f32 %v4601_v20, %v2286_v43  ;;  %v2285_v47 = vsel %vm2221_vm3, %v2135_v32, %v2253_v42  ;;  %3780 = vmatpush3.bf16.msra.mxu0 %v3779_v38 }
 0x641   : > { %v2321_v50 = vmul.f32 %v4601_v20, %v2285_v47 }
 0x642   : > { %v3432_v51 = vpop.f32.mrb[116].mxu0  ;;  %v2358_v52 = vadd.f32 %v4606_v23, %v2322_v45 }
 0x643   : > { %v2150_v54 = vadd.f32 %v3432_v51, %v4596_v16  ;;  %v2144_v56 = vpop.f32.mrb[117].mxu0  ;;  %v2357_v58 = vadd.f32 %v4606_v23, %v2321_v50 }
 0x644   : > { %v2145_v61 = vadd.f32 %v2144_v56, %v4596_v16 }
 0x645   : > { %vm2224_vm4 = vcmp.gt.f32.partialorder %v2150_v54, 0.0  ;;  %v2256_v63 = vmul.f32 0.2, %v2150_v54  ;;  %v3781_v33 = vpack.c.bf16 %v2358_v52, %v2357_v58 }
 0x646   : > { %vm2223_vm5 = vcmp.gt.f32.partialorder %v2145_v61, 0.0  ;;  %v2255_v0 = vmul.f32 0.2, %v2145_v61 }
 0x647   : > { %v2288_v3 = vsel %vm2224_vm4, %v2150_v54, %v2256_v63  ;;  %3782 = vmatprep.subr.bf16.mxu0 %v3781_v33 }
 0x648   : > { %v2324_v28 = vmul.f32 %v4601_v20, %v2288_v3  ;;  %v2287_v30 = vsel %vm2223_vm5, %v2145_v61, %v2255_v0  ;;  %3784 = vmatpush3.bf16.msra.mxu0 %v3783_v53 }
 0x649   : > { %v2323_v38 = vmul.f32 %v4601_v20, %v2287_v30 }
 0x64a   : > { %v3435_v4 = vpop.f32.mrb[118].mxu0  ;;  %v2360_v5 = vadd.f32 %v4606_v23, %v2324_v28 }
 0x64b   : > { %v2160_v39 = vadd.f32 %v3435_v4, %v4596_v16  ;;  %v2154_v6 = vpop.f32.mrb[119].mxu0  ;;  %v2359_v9 = vadd.f32 %v4606_v23, %v2323_v38 }
 0x64c   : > { %v2155_v57 = vadd.f32 %v2154_v6, %v4596_v16 }
 0x64d   : > { %vm2226_vm6 = vcmp.gt.f32.partialorder %v2160_v39, 0.0  ;;  %v2258_v11 = vmul.f32 0.2, %v2160_v39  ;;  %v3785_v13 = vpack.c.bf16 %v2360_v5, %v2359_v9 }
 0x64e   : > { %vm2225_vm7 = vcmp.gt.f32.partialorder %v2155_v57, 0.0  ;;  %v2257_v14 = vmul.f32 0.2, %v2155_v57 }
 0x64f   : > { %v2290_v17 = vsel %vm2226_vm6, %v2160_v39, %v2258_v11  ;;  %3786 = vmatprep.subr.bf16.mxu0 %v3785_v13 }
 0x650   : > { %v2326_v46 = vmul.f32 %v4601_v20, %v2290_v17  ;;  %v2289_v48 = vsel %vm2225_vm7, %v2155_v57, %v2257_v14  ;;  %3788 = vmatpush3.bf16.msra.mxu0 %v3787_v2 }
 0x651   : > { %v2325_v53 = vmul.f32 %v4601_v20, %v2289_v48  ;;  %v2451_v48 = vld [vmem:[%s4955_s9 + $0x8] sm:$0xff] }
 0x652   : > { %v3438_v18 = vpop.f32.mrb[120].mxu0  ;;  %v2362_v21 = vadd.f32 %v4606_v23, %v2326_v46 }
 0x653   : > { %v2170_v24 = vadd.f32 %v3438_v18, %v4596_v16  ;;  %v2164_v31 = vpop.f32.mrb[121].mxu0  ;;  %v2361_v25 = vadd.f32 %v4606_v23, %v2325_v53 }
 0x654   : > { %v2165_v26 = vadd.f32 %v2164_v31, %v4596_v16  ;;  %v2455_v31 = vld [vmem:[%s4955_s9 + $0x28] sm:$0xff] }
 0x655   : > { %vm2228_vm8 = vcmp.gt.f32.partialorder %v2170_v24, 0.0  ;;  %v2260_v34 = vmul.f32 0.2, %v2170_v24  ;;  %v3789_v29 = vpack.c.bf16 %v2362_v21, %v2361_v25  ;;  %v2457_v25 = vld [vmem:[%s4955_s9 + $0x38] sm:$0xff] }
 0x656   : > { %vm2227_vm9 = vcmp.gt.f32.partialorder %v2165_v26, 0.0  ;;  %v2259_v37 = vmul.f32 0.2, %v2165_v26 }
 0x657   : > { %v2292_v32 = vsel %vm2228_vm8, %v2170_v24, %v2260_v34  ;;  %3790 = vmatprep.subr.bf16.mxu0 %v3789_v29  ;;  %v2454_v24 = vld [vmem:[%s4955_s9 + $0x20] sm:$0xff]  ;;  %v2459_v29 = vld [vmem:[%s4955_s9 + $0x48] sm:$0xff] }
 0x658   : > { %v2328_v60 = vmul.f32 %v4601_v20, %v2292_v32  ;;  %v2291_v62 = vsel %vm2227_vm9, %v2165_v26, %v2259_v37  ;;  %3792 = vmatpush3.bf16.msra.mxu0 %v3791_v12  ;;  %v3817_v10 = vpack.c.bf16 %v2455_v31, %v2454_v24  ;;  %v2458_v34 = vld [vmem:[%s4955_s9 + $0x40] sm:$0xff]  ;;  %v2460_v32 = vld [vmem:[%s4955_s9 + $0x50] sm:$0xff]  ;;  %v2669_v31 = vld [vmem:[%s4959_s13 + $0x58] sm:$0xff] }
 0x659   : > { %v2327_v2 = vmul.f32 %v4601_v20, %v2291_v62  ;;  %v3825_v37 = vpack.c.bf16 %v2459_v29, %v2458_v34  ;;  %v2668_v24 = vld [vmem:[%s4959_s13 + $0x50] sm:$0xff] }
 0x65a   : > { %v3441_v35 = vpop.f32.mrb[122].mxu0  ;;  %v2364_v40 = vadd.f32 %v4606_v23, %v2328_v60  ;;  %v2461_v60 = vld [vmem:[%s4955_s9 + $0x58] sm:$0xff] }
 0x65b   : > { %v2180_v42 = vadd.f32 %v3441_v35, %v4596_v16  ;;  %v2174_v43 = vpop.f32.mrb[123].mxu0  ;;  %v2363_v45 = vadd.f32 %v4606_v23, %v2327_v2  ;;  %v3829_v62 = vpack.c.bf16 %v2461_v60, %v2460_v32  ;;  %v2462_v2 = vld [vmem:[%s4955_s9 + $0x60] sm:$0xff]  ;;  %v2463_v35 = vld [vmem:[%s4955_s9 + $0x68] sm:$0xff] }
 0x65c   : > { %v2175_v47 = vadd.f32 %v2174_v43, %v4596_v16  ;;  %v2465_v43 = vld [vmem:[%s4955_s9 + $0x78] sm:$0xff] }
 0x65d   : > { %vm2230_vm10 = vcmp.gt.f32.partialorder %v2180_v42, 0.0  ;;  %v2262_v50 = vmul.f32 0.2, %v2180_v42  ;;  %v3793_v51 = vpack.c.bf16 %v2364_v40, %v2363_v45  ;;  %v3833_v40 = vpack.c.bf16 %v2463_v35, %v2462_v2  ;;  %v2671_v2 = vld [vmem:[%s4959_s13 + $0x68] sm:$0xff] }
 0x65e   : > { %vm2229_vm11 = vcmp.gt.f32.partialorder %v2175_v47, 0.0  ;;  %v2261_v52 = vmul.f32 0.2, %v2175_v47 }
 0x65f   : > { %v2294_v54 = vsel %vm2230_vm10, %v2180_v42, %v2262_v50  ;;  %3794 = vmatprep.subr.bf16.mxu0 %v3793_v51  ;;  %v2464_v42 = vld [vmem:[%s4955_s9 + $0x70] sm:$0xff]  ;;  %v2555_v50 = vld [vmem:[%s4957_s11 + $0x8] sm:$0xff] }
 0x660   : > { %v2330_v44 = vmul.f32 %v4601_v20, %v2294_v54  ;;  %v2293_v8 = vsel %vm2229_vm11, %v2175_v47, %v2261_v52  ;;  %3796 = vmatpush3.bf16.msra.mxu0 %v3795_v27  ;;  %v3837_v45 = vpack.c.bf16 %v2465_v43, %v2464_v42  ;;  %v2554_v47 = vld [vmem:[%s4957_s11] sm:$0xff]  ;;  %v2556_v51 = vld [vmem:[%s4957_s11 + $0x10] sm:$0xff]  ;;  %v2557_v54 = vld [vmem:[%s4957_s11 + $0x18] sm:$0xff] }
 0x661   : > { %v2329_v12 = vmul.f32 %v4601_v20, %v2293_v8  ;;  %v3841_v52 = vpack.c.bf16 %v2555_v50, %v2554_v47  ;;  %v2558_v8 = vld [vmem:[%s4957_s11 + $0x20] sm:$0xff]  ;;  %v2673_v42 = vld [vmem:[%s4959_s13 + $0x78] sm:$0xff] }
 0x662   : > { %v3444_v56 = vpop.f32.mrb[124].mxu0  ;;  %v2366_v58 = vadd.f32 %v4606_v23, %v2330_v44  ;;  %v3845_v44 = vpack.c.bf16 %v2557_v54, %v2556_v51 }
 0x663   : > { %v2190_v61 = vadd.f32 %v3444_v56, %v4596_v16  ;;  %v2184_v63 = vpop.f32.mrb[125].mxu0  ;;  %v2365_v33 = vadd.f32 %v4606_v23, %v2329_v12  ;;  %v2559_v12 = vld [vmem:[%s4957_s11 + $0x28] sm:$0xff]  ;;  %3842 = vmatprep.subr.bf16.mxu1 %v3841_v52 }
 0x664   : > { %v2185_v0 = vadd.f32 %v2184_v63, %v4596_v16  ;;  %3844 = vmatpush3.bf16.msra.mxu1 %v3841_v52  ;;  %v3849_v56 = vpack.c.bf16 %v2559_v12, %v2558_v8 }
 0x665   : > { %vm2232_vm12 = vcmp.gt.f32.partialorder %v2190_v61, 0.0  ;;  %v2264_v3 = vmul.f32 0.2, %v2190_v61  ;;  %v3797_v28 = vpack.c.bf16 %v2366_v58, %v2365_v33  ;;  %3846 = vmatprep.subr.bf16.mxu1 %v3845_v44  ;;  %v2560_v58 = vld [vmem:[%s4957_s11 + $0x30] sm:$0xff]  ;;  %v2562_v33 = vld [vmem:[%s4957_s11 + $0x40] sm:$0xff] }
 0x666   : > { %vm2231_vm13 = vcmp.gt.f32.partialorder %v2185_v0, 0.0  ;;  %v2263_v30 = vmul.f32 0.2, %v2185_v0 }
 0x667   : > { %v2296_v38 = vsel %vm2232_vm12, %v2190_v61, %v2264_v3  ;;  %3798 = vmatprep.subr.bf16.mxu0 %v3797_v28  ;;  %v2561_v61 = vld [vmem:[%s4957_s11 + $0x38] sm:$0xff]  ;;  %v2564_v28 = vld [vmem:[%s4957_s11 + $0x50] sm:$0xff] }
 0x668   : > { %v2332_v19 = vmul.f32 %v4601_v20, %v2296_v38  ;;  %v2295_v22 = vsel %vm2231_vm13, %v2185_v0, %v2263_v30  ;;  %3800 = vmatpush3.bf16.msra.mxu0 %v3799_v49  ;;  %3848 = vmatpush3.bf16.msra.mxu1 %v3845_v44  ;;  %v3853_v63 = vpack.c.bf16 %v2561_v61, %v2560_v58  ;;  %v2563_v0 = vld [vmem:[%s4957_s11 + $0x48] sm:$0xff]  ;;  %v2565_v30 = vld [vmem:[%s4957_s11 + $0x58] sm:$0xff] }
 0x669   : > { %v2331_v27 = vmul.f32 %v4601_v20, %v2295_v22  ;;  %3850 = vmatprep.subr.bf16.mxu1 %v3849_v56  ;;  %v3857_v3 = vpack.c.bf16 %v2563_v0, %v2562_v33  ;;  %v3861_v38 = vpack.c.bf16 %v2565_v30, %v2564_v28  ;;  %v2567_v22 = vld [vmem:[%s4957_s11 + $0x68] sm:$0xff] }
 0x66a   : > { %v3447_v4 = vpop.f32.mrb[126].mxu0  ;;  %v2368_v5 = vadd.f32 %v4606_v23, %v2332_v19  ;;  %v2566_v19 = vld [vmem:[%s4957_s11 + $0x60] sm:$0xff] }
 0x66b   : > { %v2200_v39 = vadd.f32 %v3447_v4, %v4596_v16  ;;  %v2194_v6 = vpop.f32.mrb[127].mxu0  ;;  %v2367_v9 = vadd.f32 %v4606_v23, %v2331_v27  ;;  %v3865_v27 = vpack.c.bf16 %v2567_v22, %v2566_v19  ;;  %v2568_v4 = vld [vmem:[%s4957_s11 + $0x70] sm:$0xff] }
 0x66c   : > { %v2195_v57 = vadd.f32 %v2194_v6, %v4596_v16  ;;  %v2450_v16 = vld [vmem:[%s4955_s9] sm:$0xff]  ;;  %3852 = vmatpush3.bf16.msra.mxu1 %v3849_v56 }
 0x66d   : > { %vm2234_vm14 = vcmp.gt.f32.partialorder %v2200_v39, 0.0  ;;  %v2266_v11 = vmul.f32 0.2, %v2200_v39  ;;  %v3801_v13 = vpack.c.bf16 %v2368_v5, %v2367_v9  ;;  %v3809_v21 = vpack.c.bf16 %v2451_v48, %v2450_v16  ;;  %3854 = vmatprep.subr.bf16.mxu1 %v3853_v63  ;;  %v2569_v5 = vld [vmem:[%s4957_s11 + $0x78] sm:$0xff]  ;;  %v2662_v48 = vld [vmem:[%s4959_s13 + $0x20] sm:$0xff] }
 0x66e   : > { %vm2233_vm15 = vcmp.gt.f32.partialorder %v2195_v57, 0.0  ;;  %v2265_v14 = vmul.f32 0.2, %v2195_v57  ;;  %v2838_v56 = vld [vmem:[%s4960_s14] ss:$0 sm:$0xff] }
 0x66f   : > { %v2298_v17 = vsel %vm2234_vm14, %v2200_v39, %v2266_v11  ;;  %3802 = vmatprep.subr.bf16.mxu0 %v3801_v13  ;;  %v3869_v39 = vpack.c.bf16 %v2569_v5, %v2568_v4 }
 0x670   : > { %v2334_v36 = vmul.f32 %v4601_v20, %v2298_v17  ;;  %v2297_v41 = vsel %vm2233_vm15, %v2195_v57, %v2265_v14  ;;  %3804 = vmatpush3.bf16.msra.mxu0 %v3803_v1  ;;  %3856 = vmatpush3.bf16.msra.mxu1 %v3853_v63  ;;  %v2658_v17 = vld [vmem:[%s4959_s13] sm:$0xff] }
 0x671   : > { %v2333_v49 = vmul.f32 %v4601_v20, %v2297_v41  ;;  %v2453_v20 = vld [vmem:[%s4955_s9 + $0x18] sm:$0xff]  ;;  %3858 = vmatprep.subr.bf16.mxu1 %v3857_v3  ;;  %v2660_v41 = vld [vmem:[%s4959_s13 + $0x10] sm:$0xff] }
 0x672   : > { %v2370_v46 = vadd.f32 %v4606_v23, %v2334_v36  ;;  %v3813_v1 = vpack.c.bf16 %v2453_v20, %v2452_v55  ;;  %v2659_v36 = vld [vmem:[%s4959_s13 + $0x8] sm:$0xff]  ;;  %v2665_v55 = vld [vmem:[%s4959_s13 + $0x38] sm:$0xff] }
 0x673   : > { %v2369_v53 = vadd.f32 %v4606_v23, %v2333_v49  ;;  %v2374_v23 = vld [vmem:[%s4948_s2 + $0x18] sm:$0xff]  ;;  %v3873_v49 = vpack.c.bf16 %v2659_v36, %v2658_v17 }
 0x674   : > { %3860 = vmatpush3.bf16.msra.mxu1 %v3857_v3 }
 0x675   : > { %v3805_v18 = vpack.c.bf16 %v2370_v46, %v2369_v53  ;;  %3862 = vmatprep.subr.bf16.mxu1 %v3861_v38  ;;  %v2661_v46 = vld [vmem:[%s4959_s13 + $0x18] sm:$0xff]  ;;  %v2663_v53 = vld [vmem:[%s4959_s13 + $0x28] sm:$0xff] }
 0x676   : > { %v3877_v16 = vpack.c.bf16 %v2661_v46, %v2660_v41 }
 0x677   : > { %3806 = vmatprep.subr.bf16.mxu0 %v3805_v18  ;;  %v3881_v18 = vpack.c.bf16 %v2663_v53, %v2662_v48 }
 0x678   : > { %3808 = vmatpush3.bf16.msra.mxu0 %v3807_v15  ;;  %v2456_v15 = vld [vmem:[%s4955_s9 + $0x30] sm:$0xff]  ;;  %3864 = vmatpush3.bf16.msra.mxu1 %v3861_v38 }
 0x679   : > { %3810 = vmatprep.subr.bf16.mxu0 %v3809_v21  ;;  %v3821_v26 = vpack.c.bf16 %v2457_v25, %v2456_v15  ;;  %3866 = vmatprep.subr.bf16.mxu1 %v3865_v27 }
 0x67b   : > { %2440 = vmatmul.mubr.f32.vlgmr.msra.gmra.mrb[128].mxu0 %v2371_v59  ;;  %v2666_v59 = vld [vmem:[%s4959_s13 + $0x40] sm:$0xff] }
 0x67c   : > { %2444 = vmatprep.mubr.f32.mxu0 %v2374_v23  ;;  %3812 = vmatpush3.bf16.msra.mxu0 %v3809_v21  ;;  %v2664_v21 = vld [vmem:[%s4959_s13 + $0x30] sm:$0xff]  ;;  %v2667_v23 = vld [vmem:[%s4959_s13 + $0x48] sm:$0xff] }
 0x67d   : > { %3814 = vmatprep.subr.bf16.mxu0 %v3813_v1  ;;  %3868 = vmatpush3.bf16.msra.mxu1 %v3865_v27  ;;  %v3885_v20 = vpack.c.bf16 %v2665_v55, %v2664_v21 }
 0x67e   : > { %3870 = vmatprep.subr.bf16.mxu1 %v3869_v39 }
 0x67f   : > { %2445 = vmatmul.mubr.f32.gmra.mrb[130].mxu0 %v2373_v7  ;;  %v3893_v7 = vpack.c.bf16 %v2669_v31, %v2668_v24 }
 0x680   : > { %3816 = vmatpush3.bf16.msra.mxu0 %v3813_v1  ;;  %v3889_v1 = vpack.c.bf16 %v2667_v23, %v2666_v59 }
 0x681   : > { %3818 = vmatprep.subr.bf16.mxu0 %v3817_v10  ;;  %3872 = vmatpush3.bf16.msra.mxu1 %v3869_v39 }
 0x684   : > { %3820 = vmatpush3.bf16.msra.mxu0 %v3817_v10  ;;  %v2836_v10 = vld [vmem:[%s4956_s10] ss:$0 sm:$0xff] }
 0x685   : > { %3822 = vmatprep.subr.bf16.mxu0 %v3821_v26 }
 0x688   : > { %3824 = vmatpush3.bf16.msra.mxu0 %v3821_v26 }
 0x689   : > { %3826 = vmatprep.subr.bf16.mxu0 %v3825_v37 }
 0x68c   : > { %3828 = vmatpush3.bf16.msra.mxu0 %v3825_v37 }
 0x68d   : > { %3830 = vmatprep.subr.bf16.mxu0 %v3829_v62 }
 0x690   : > { %3832 = vmatpush3.bf16.msra.mxu0 %v3829_v62  ;;  %v2670_v62 = vld [vmem:[%s4959_s13 + $0x60] sm:$0xff] }
 0x691   : > { %3834 = vmatprep.subr.bf16.mxu0 %v3833_v40  ;;  %v3897_v35 = vpack.c.bf16 %v2671_v2, %v2670_v62 }
 0x694   : > { %3836 = vmatpush3.bf16.msra.mxu0 %v3833_v40  ;;  %v2672_v40 = vld [vmem:[%s4959_s13 + $0x70] sm:$0xff] }
 0x695   : > { %3838 = vmatprep.subr.bf16.mxu0 %v3837_v45  ;;  %v3901_v43 = vpack.c.bf16 %v2673_v42, %v2672_v40 }
 0x698   : > { %3840 = vmatpush3.bf16.msra.mxu0 %v3837_v45  ;;  %v2837_v45 = vld [vmem:[%s4958_s12] ss:$0 sm:$0xff] }
 0x699   : > { %3874 = vmatprep.subr.bf16.mxu0 %v3873_v49 }
 0x74e   : > { %v3068_v6 = vpop.f32.mrb[128].mxu0 }
 0x74f   : > { %v3069_v9 = vpop.f32.mrb[129].mxu0 }
 0x750   : > { %v3070_v57 = vadd.f32 %v3069_v9, %v3068_v6 }
 0x752   : > { %v3071_v11 = vpop.f32.mrb[130].mxu0  ;;  %3480 = vmatprep.mubr.f32.mxu0 %v3070_v57 }
 0x753   : > { %v3072_v13 = vpop.f32.mrb[131].mxu0 }
 0x754   : > { %v3073_v14 = vadd.f32 %v3072_v13, %v3071_v11 }
 0x756   : > { %3481 = vmatmul.mubr.f32.vlgmr.msra.gmra.mrb[132].mxu0 %v3073_v14 }
 0x757   : > { %3876 = vmatpush3.bf16.msra.mxu0 %v3873_v49 }
 0x758   : > { %3878 = vmatprep.subr.bf16.mxu0 %v3877_v16 }
 0x75b   : > { %3880 = vmatpush3.bf16.msra.mxu0 %v3877_v16 }
 0x75c   : > { %3882 = vmatprep.subr.bf16.mxu0 %v3881_v18 }
 0x75f   : > { %3884 = vmatpush3.bf16.msra.mxu0 %v3881_v18 }
 0x760   : > { %3886 = vmatprep.subr.bf16.mxu0 %v3885_v20 }
 0x763   : > { %3888 = vmatpush3.bf16.msra.mxu0 %v3885_v20 }
 0x764   : > { %3890 = vmatprep.subr.bf16.mxu0 %v3889_v1 }
 0x767   : > { %3892 = vmatpush3.bf16.msra.mxu0 %v3889_v1 }
 0x768   : > { %3894 = vmatprep.subr.bf16.mxu0 %v3893_v7 }
 0x76b   : > { %3896 = vmatpush3.bf16.msra.mxu0 %v3893_v7 }
 0x76c   : > { %3898 = vmatprep.subr.bf16.mxu0 %v3897_v35 }
 0x76f   : > { %3900 = vmatpush3.bf16.msra.mxu0 %v3897_v35 }
 0x770   : > { %3902 = vmatprep.subr.bf16.mxu0 %v3901_v43 }
 0x773   : > { %3904 = vmatpush3.bf16.msra.mxu0 %v3901_v43 }
 0x829   : > { %v3482_v15 = vpop.f32.mrb[132].mxu0 }
 0x82a   : > { %v2545_v25 = vadd.f32 %v3482_v15, %v2836_v10  ;;  %v2539_v26 = vpop.f32.mrb[133].mxu0 }
 0x82b   : > { %v2540_v34 = vadd.f32 %v2836_v10, %v2539_v26 }
 0x82c   : > { %v2551_v29 = vmul.f32 0.2, %v2545_v25  ;;  %vm2549_vm0 = vcmp.gt.f32.partialorder %v2545_v25, 0.0 }
 0x82d   : > { %v2550_v37 = vmul.f32 0.2, %v2540_v34  ;;  %vm2548_vm1 = vcmp.gt.f32.partialorder %v2540_v34, 0.0 }
 0x82e   : > { %v2553_v60 = vsel %vm2549_vm0, %v2545_v25, %v2551_v29 }
 0x82f   : > { %v2552_v32 = vsel %vm2548_vm1, %v2540_v34, %v2550_v37 }
 0x830   : > { %3515 = vmatprep.mubr.f32.mxu1 %v2552_v32 }
 0x831   : > { %3516 = vmatmul.mubr.f32.vlgmr.msra.gmra.mrb[128].mxu1 %v2553_v60 }
 0x904   : > { %v3517_v47 = vpop.f32.mrb[128].mxu1 }
 0x905   : > { %v2649_v50 = vadd.f32 %v3517_v47, %v2837_v45  ;;  %v2643_v51 = vpop.f32.mrb[129].mxu1 }
 0x906   : > { %v2644_v52 = vadd.f32 %v2837_v45, %v2643_v51 }
 0x907   : > { %v2655_v54 = vmul.f32 0.2, %v2649_v50  ;;  %vm2653_vm2 = vcmp.gt.f32.partialorder %v2649_v50, 0.0 }
 0x908   : > { %v2654_v44 = vmul.f32 0.2, %v2644_v52  ;;  %vm2652_vm3 = vcmp.gt.f32.partialorder %v2644_v52, 0.0 }
 0x909   : > { %v2657_v12 = vsel %vm2653_vm2, %v2649_v50, %v2655_v54 }
 0x90a   : > { %v2656_v8 = vsel %vm2652_vm3, %v2644_v52, %v2654_v44 }
 0x90b   : > { %3550 = vmatprep.mubr.f32.mxu0 %v2656_v8 }
 0x90c   : > { %3551 = vmatmul.mubr.f32.vlgmr.msra.gmra.mrb[134].mxu0 %v2657_v12 }
 0x9df   : > { %v3552_v58 = vpop.f32.mrb[134].mxu0 }
 0x9e0   : > { %v2753_v61 = vadd.f32 %v3552_v58, %v2838_v56  ;;  %v2747_v63 = vpop.f32.mrb[135].mxu0 }
 0x9e1   : > { %v2748_v33 = vadd.f32 %v2838_v56, %v2747_v63 }
 0x9e2   : > { %2757 = vst [vmem:[%s514_s22 + $0x8] sm:$0xff] %v2753_v61 }
 0x9e3   : > { %2756 = vst [vmem:[%s514_s22] sm:$0xff] %v2748_v33 }
 0x9e4 PF: > { %s25_s18 = sadd.s32 1, %s3983_s18  }
 0x9e5   : > { %p22_p4 = scmp.ge.s32.totalorder %s25_s18, 4  }
 0x9e7   :  { %24 = sbr.rel (!%p22_p4) target bundleno = 1 (0x1), region = 113 }

</bundles_post_ra>
